<compile_context>
chip_gen: v6e
topology: v6e:2x2x1
jax: 0.10.0
libtpu: 0.0.40
codegen_flags: <defaults>
</compile_context>

<pallas_src>
import jax
import jax.numpy as jnp
from jax import lax
from jax.experimental import pallas as pl
from jax.experimental.pallas import tpu as pltpu


_VMEM = pl.BlockSpec(memory_space=pltpu.MemorySpace.VMEM)


# ----------------------------- fused Pallas kernel --------------------------

def make_fused_rnn_kernel(num_layers, S, B, H):
    """Fully fused bidirectional relu-RNN stack + Linear(2H->1) + sigmoid.

    Ref layout (grid-less, everything VMEM-resident):
      x_ref            : (S*B, D_in)  time-major flattened input, row = t*B + b
      per layer l (4 refs):
        wih_ref  (D_l, 2H)  input->hidden, transposed; [:, :H]=fwd, [:, H:]=bwd
        whhf_ref (H, H)     fwd hidden->hidden, transposed
        whhb_ref (H, H)     bwd hidden->hidden, transposed
        b_ref    (1, 2H)    combined b_ih + b_hh, [fwd | bwd]
      fcw_ref          : (1, 2H)      fc weight row
      fcb_ref          : (1, 1)       fc bias
      out_ref          : (1, S*B)     sigmoid(logits), lane-dense output
      hf_ref, hb_ref   : (S*B, H)     scratch — current layer's fwd/bwd states
    """

    def kernel(*refs):
        x_ref = refs[0]
        layer_refs = refs[1:1 + 4 * num_layers]
        fcw_ref = refs[1 + 4 * num_layers]
        fcb_ref = refs[2 + 4 * num_layers]
        out_ref = refs[3 + 4 * num_layers]
        hf_ref = refs[4 + 4 * num_layers]
        hb_ref = refs[5 + 4 * num_layers]

        f32 = jnp.float32

        def run_layer(pre, whhf_ref, whhb_ref):
            # pre: (S*B, 2H) precomputed input projection + bias (hoisted out of
            # the serial chain).  Time loop fully unrolled (S static); forward
            # and backward recurrences interleave in the same iteration.
            whh_f = whhf_ref[...]
            whh_b = whhb_ref[...]
            h_f = jnp.zeros((B, H), f32)
            h_b = jnp.zeros((B, H), f32)
            for k in range(S):
                tf = k
                tb = S - 1 - k
                h_f = jnp.maximum(
                    pre[tf * B:(tf + 1) * B, :H]
                    + jnp.dot(h_f, whh_f, preferred_element_type=f32), 0.0)
                h_b = jnp.maximum(
                    pre[tb * B:(tb + 1) * B, H:]
                    + jnp.dot(h_b, whh_b, preferred_element_type=f32), 0.0)
                hf_ref[tf * B:(tf + 1) * B, :] = h_f
                hb_ref[tb * B:(tb + 1) * B, :] = h_b

        # ---- layer 0: one wide input-projection matmul, then the recurrence ----
        wih0, whhf0, whhb0, b0 = layer_refs[0:4]
        pre = (jnp.dot(x_ref[...], wih0[...], preferred_element_type=f32)
               + b0[...])
        run_layer(pre, whhf0, whhb0)

        # ---- layers 1..L-1: input is [h_fwd | h_bwd] of the previous layer ----
        for l in range(1, num_layers):
            wih, whhf, whhb, b = layer_refs[4 * l:4 * l + 4]
            hf = hf_ref[...]
            hb = hb_ref[...]
            pre = (jnp.dot(hf, wih[:H, :], preferred_element_type=f32)
                   + jnp.dot(hb, wih[H:, :], preferred_element_type=f32)
                   + b[...])
            run_layer(pre, whhf, whhb)

        # ---- fused Linear(2H->1) + sigmoid + nan_to_num, lane-dense (1, S*B) ----
        hf = hf_ref[...]
        hb = hb_ref[...]
        dn = (((1,), (1,)), ((), ()))  # contract feature axes -> (1, S*B)
        logits = (lax.dot_general(fcw_ref[:, :H], hf, dn,
                                  preferred_element_type=f32)
                  + lax.dot_general(fcw_ref[:, H:], hb, dn,
                                    preferred_element_type=f32)
                  + fcb_ref[...])
        y = 1.0 / (1.0 + jnp.exp(-logits))
        # torch.nan_to_num: sigmoid is bounded in [0,1], so only NaN can occur.
        out_ref[...] = jnp.where(jnp.isnan(y), 0.0, y)

    return kernel


# ----------------------------- wrappers --------------------------------------

@jax.jit
def recreated_model_forward(x, kparams):
    """x: (B, S, input_size) float32, kparams from prepare_kernel_params
       -> (B, S) float32 (batch-first, like the PyTorch module)."""
    B, S, D = x.shape
    num_layers = len(kparams["layers"])
    H = kparams["layers"][0]["whh_f"].shape[0]

    # time-major flatten: row index = t*B + b
    x_tm = jnp.transpose(x, (1, 0, 2)).reshape(S * B, D)

    args = [x_tm]
    for lp in kparams["layers"]:
        args += [lp["wih"], lp["whh_f"], lp["whh_b"], lp["b"]]
    args += [kparams["fc_w"], kparams["fc_b"]]

    kernel = make_fused_rnn_kernel(num_layers, S, B, H)
    out = pl.pallas_call(
        kernel,
        out_shape=jax.ShapeDtypeStruct((1, S * B), jnp.float32),
        in_specs=[_VMEM] * len(args),
        out_specs=_VMEM,
        scratch_shapes=[pltpu.VMEM((S * B, H), jnp.float32),
                        pltpu.VMEM((S * B, H), jnp.float32)],
    )(*args)
    # (1, S*B) with column index t*B + b  ->  (S, B)  ->  (B, S)
    return out.reshape(S, B).T


def prepare_kernel_params(params):
    """One-time repack to the MXU-friendly kernel layout: transpose weights,
    concatenate directions, fold the two RNN biases together (done once,
    outside the jitted forward)."""
    layers = []
    for pf, pb in params["layers"]:
        layers.append({
            "wih": jnp.concatenate([pf["wih"].T, pb["wih"].T], axis=1),   # (Din, 2H)
            "whh_f": pf["whh"].T,                                         # (H, H)
            "whh_b": pb["whh"].T,                                         # (H, H)
            "b": jnp.concatenate([pf["bih"] + pf["bhh"],
                                  pb["bih"] + pb["bhh"]])[None, :],       # (1, 2H)
        })
    return {
        "layers": layers,
        "fc_w": params["fc_w"],            # (1, 2H) — already a row vector
        "fc_b": params["fc_b"][None, :],   # (1, 1)
    }


def init_params(key, input_size, hidden_size, num_layers):
    """Deterministic PyTorch-style uniform(-1/sqrt(H), 1/sqrt(H)) init."""
    k = 1.0 / jnp.sqrt(jnp.float32(hidden_size))
    params = {"layers": []}
    for layer in range(num_layers):
        d_in = input_size if layer == 0 else 2 * hidden_size
        dirs = []
        for _ in range(2):  # forward / backward
            key, k1, k2, k3, k4 = jax.random.split(key, 5)
            dirs.append({
                "wih": jax.random.uniform(k1, (hidden_size, d_in), jnp.float32, -k, k),
                "whh": jax.random.uniform(k2, (hidden_size, hidden_size), jnp.float32, -k, k),
                "bih": jax.random.uniform(k3, (hidden_size,), jnp.float32, -k, k),
                "bhh": jax.random.uniform(k4, (hidden_size,), jnp.float32, -k, k),
            })
        params["layers"].append(dirs)
    kfc = 1.0 / jnp.sqrt(jnp.float32(2 * hidden_size))
    key, k1, k2 = jax.random.split(key, 3)
    params["fc_w"] = jax.random.uniform(k1, (1, 2 * hidden_size), jnp.float32, -kfc, kfc)
    params["fc_b"] = jax.random.uniform(k2, (1,), jnp.float32, -kfc, kfc)
    return params


# ----------------------------- pure-JAX reference ---------------------------

def reference_forward(x, params, num_layers):
    def rnn_dir(x_tm, wih, whh, b):
        h0 = jnp.zeros((x_tm.shape[1], whh.shape[0]), jnp.float32)

        def step(h, xt):
            h_new = jnp.maximum(xt @ wih.T + h @ whh.T + b, 0.0)
            return h_new, h_new

        _, hs = lax.scan(step, h0, x_tm)
        return hs

    B, S, _ = x.shape
    layer_in = x
    for layer in range(num_layers):
        outs = []
        for d in range(2):
            p = params["layers"][layer][d]
            xin = layer_in if d == 0 else layer_in[:, ::-1, :]
            hs = rnn_dir(jnp.transpose(xin, (1, 0, 2)),
                         p["wih"], p["whh"], p["bih"] + p["bhh"])
            hb = jnp.transpose(hs, (1, 0, 2))
            if d == 1:
                hb = hb[:, ::-1, :]
            outs.append(hb)
        layer_in = jnp.concatenate(outs, axis=-1)
    logits = layer_in @ params["fc_w"].T + params["fc_b"]
    y = jax.nn.sigmoid(logits[..., 0])
    return jnp.nan_to_num(y)


# ----------------------------- main ------------------------------------------

if __name__ == "__main__":
    batch, seq, input_size, hidden_size, num_layers = 2, 8, 16, 32, 2

    key = jax.random.PRNGKey(0)
    key, kx, kp = jax.random.split(key, 3)
    x = jax.random.normal(kx, (batch, seq, input_size), jnp.float32)
    params = init_params(kp, input_size, hidden_size, num_layers)
    kparams = prepare_kernel_params(params)   # one-time weight repack (outside jit)

    out = recreated_model_forward(x, kparams)
    out = jax.block_until_ready(out)

    ref = reference_forward(x, params, num_layers)
    assert out.shape == (batch, seq), out.shape
    assert jnp.allclose(out, ref, atol=1e-4, rtol=1e-4), (
        f"max abs diff = {jnp.max(jnp.abs(out - ref))}")

    print("KERNEL_OK")
</pallas_src>

<mosaic_0001>
module attributes {stable_mosaic.version = 11 : i64} {
  func.func @kernel(%arg0: memref<16x16xf32, #tpu.memory_space<vmem>>, %arg1: memref<16x64xf32, #tpu.memory_space<vmem>>, %arg2: memref<32x32xf32, #tpu.memory_space<vmem>>, %arg3: memref<32x32xf32, #tpu.memory_space<vmem>>, %arg4: memref<1x64xf32, #tpu.memory_space<vmem>>, %arg5: memref<64x64xf32, #tpu.memory_space<vmem>>, %arg6: memref<32x32xf32, #tpu.memory_space<vmem>>, %arg7: memref<32x32xf32, #tpu.memory_space<vmem>>, %arg8: memref<1x64xf32, #tpu.memory_space<vmem>>, %arg9: memref<1x64xf32, #tpu.memory_space<vmem>>, %arg10: memref<1x1xf32, #tpu.memory_space<vmem>>, %arg11: memref<1x16xf32, #tpu.memory_space<vmem>>, %arg12: memref<16x32xf32, #tpu.memory_space<vmem>>, %arg13: memref<16x32xf32, #tpu.memory_space<vmem>>) attributes {dimension_semantics = [], scalar_prefetch = 0 : i64, scratch_operands = 2 : i64, tpu.core_type = #tpu.core_type<tc>} {
    %c0 = arith.constant 0 : index
    %c0_0 = arith.constant 0 : index
    %0 = vector.load %arg0[%c0, %c0_0] : memref<16x16xf32, #tpu.memory_space<vmem>>, vector<16x16xf32>
    %c0_1 = arith.constant 0 : index
    %c0_2 = arith.constant 0 : index
    %1 = vector.load %arg1[%c0_1, %c0_2] : memref<16x64xf32, #tpu.memory_space<vmem>>, vector<16x64xf32>
    %cst = arith.constant dense<0.000000e+00> : vector<16x64xf32>
    %2 = tpu.matmul %0, %1, %cst {dimension_numbers = #tpu.dot_dimension_numbers<[1], [0], [0], [1], [0, 0, 1, 1], [], []>} : vector<16x16xf32>, vector<16x64xf32>, vector<16x64xf32> -> vector<16x64xf32>
    %c0_3 = arith.constant 0 : index
    %c0_4 = arith.constant 0 : index
    %3 = vector.load %arg4[%c0_3, %c0_4] : memref<1x64xf32, #tpu.memory_space<vmem>>, vector<1x64xf32>
    %4 = vector.broadcast %3 : vector<1x64xf32> to vector<16x64xf32>
    %5 = arith.addf %2, %4 : vector<16x64xf32>
    %c0_5 = arith.constant 0 : index
    %c0_6 = arith.constant 0 : index
    %6 = vector.load %arg2[%c0_5, %c0_6] : memref<32x32xf32, #tpu.memory_space<vmem>>, vector<32x32xf32>
    %c0_7 = arith.constant 0 : index
    %c0_8 = arith.constant 0 : index
    %7 = vector.load %arg3[%c0_7, %c0_8] : memref<32x32xf32, #tpu.memory_space<vmem>>, vector<32x32xf32>
    %cst_9 = arith.constant 0.000000e+00 : f32
    %8 = vector.broadcast %cst_9 : f32 to vector<2x32xf32>
    %cst_10 = arith.constant 0.000000e+00 : f32
    %9 = vector.broadcast %cst_10 : f32 to vector<2x32xf32>
    %10 = vector.extract_strided_slice %5 {offsets = [0, 0], sizes = [2, 32], strides = [1, 1]} : vector<16x64xf32> to vector<2x32xf32>
    %cst_11 = arith.constant dense<0.000000e+00> : vector<2x32xf32>
    %11 = tpu.matmul %8, %6, %cst_11 {dimension_numbers = #tpu.dot_dimension_numbers<[1], [0], [0], [1], [0, 0, 1, 1], [], []>} : vector<2x32xf32>, vector<32x32xf32>, vector<2x32xf32> -> vector<2x32xf32>
    %12 = arith.addf %10, %11 : vector<2x32xf32>
    %cst_12 = arith.constant 0.000000e+00 : f32
    %13 = vector.broadcast %cst_12 : f32 to vector<2x32xf32>
    %14 = arith.maximumf %12, %13 : vector<2x32xf32>
    %15 = vector.extract_strided_slice %5 {offsets = [14, 32], sizes = [2, 32], strides = [1, 1]} : vector<16x64xf32> to vector<2x32xf32>
    %cst_13 = arith.constant dense<0.000000e+00> : vector<2x32xf32>
    %16 = tpu.matmul %9, %7, %cst_13 {dimension_numbers = #tpu.dot_dimension_numbers<[1], [0], [0], [1], [0, 0, 1, 1], [], []>} : vector<2x32xf32>, vector<32x32xf32>, vector<2x32xf32> -> vector<2x32xf32>
    %17 = arith.addf %15, %16 : vector<2x32xf32>
    %cst_14 = arith.constant 0.000000e+00 : f32
    %18 = vector.broadcast %cst_14 : f32 to vector<2x32xf32>
    %19 = arith.maximumf %17, %18 : vector<2x32xf32>
    %c0_15 = arith.constant 0 : index
    %c0_16 = arith.constant 0 : index
    %20 = vector.load %arg12[%c0_15, %c0_16] : memref<16x32xf32, #tpu.memory_space<vmem>>, vector<2x32xf32>
    tpu.vector_store %arg12[%c0_15, %c0_16], %14 {strides = array<i32>} : memref<16x32xf32, #tpu.memory_space<vmem>>, vector<2x32xf32>,
    %c14 = arith.constant 14 : index
    %c0_17 = arith.constant 0 : index
    %21 = vector.load %arg13[%c14, %c0_17] : memref<16x32xf32, #tpu.memory_space<vmem>>, vector<2x32xf32>
    tpu.vector_store %arg13[%c14, %c0_17], %19 {strides = array<i32>} : memref<16x32xf32, #tpu.memory_space<vmem>>, vector<2x32xf32>,
    %22 = vector.extract_strided_slice %5 {offsets = [2, 0], sizes = [2, 32], strides = [1, 1]} : vector<16x64xf32> to vector<2x32xf32>
    %cst_18 = arith.constant dense<0.000000e+00> : vector<2x32xf32>
    %23 = tpu.matmul %14, %6, %cst_18 {dimension_numbers = #tpu.dot_dimension_numbers<[1], [0], [0], [1], [0, 0, 1, 1], [], []>} : vector<2x32xf32>, vector<32x32xf32>, vector<2x32xf32> -> vector<2x32xf32>
    %24 = arith.addf %22, %23 : vector<2x32xf32>
    %cst_19 = arith.constant 0.000000e+00 : f32
    %25 = vector.broadcast %cst_19 : f32 to vector<2x32xf32>
    %26 = arith.maximumf %24, %25 : vector<2x32xf32>
    %27 = vector.extract_strided_slice %5 {offsets = [12, 32], sizes = [2, 32], strides = [1, 1]} : vector<16x64xf32> to vector<2x32xf32>
    %cst_20 = arith.constant dense<0.000000e+00> : vector<2x32xf32>
    %28 = tpu.matmul %19, %7, %cst_20 {dimension_numbers = #tpu.dot_dimension_numbers<[1], [0], [0], [1], [0, 0, 1, 1], [], []>} : vector<2x32xf32>, vector<32x32xf32>, vector<2x32xf32> -> vector<2x32xf32>
    %29 = arith.addf %27, %28 : vector<2x32xf32>
    %cst_21 = arith.constant 0.000000e+00 : f32
    %30 = vector.broadcast %cst_21 : f32 to vector<2x32xf32>
    %31 = arith.maximumf %29, %30 : vector<2x32xf32>
    %c2 = arith.constant 2 : index
    %c0_22 = arith.constant 0 : index
    %32 = vector.load %arg12[%c2, %c0_22] : memref<16x32xf32, #tpu.memory_space<vmem>>, vector<2x32xf32>
    tpu.vector_store %arg12[%c2, %c0_22], %26 {strides = array<i32>} : memref<16x32xf32, #tpu.memory_space<vmem>>, vector<2x32xf32>,
    %c12 = arith.constant 12 : index
    %c0_23 = arith.constant 0 : index
    %33 = vector.load %arg13[%c12, %c0_23] : memref<16x32xf32, #tpu.memory_space<vmem>>, vector<2x32xf32>
    tpu.vector_store %arg13[%c12, %c0_23], %31 {strides = array<i32>} : memref<16x32xf32, #tpu.memory_space<vmem>>, vector<2x32xf32>,
    %34 = vector.extract_strided_slice %5 {offsets = [4, 0], sizes = [2, 32], strides = [1, 1]} : vector<16x64xf32> to vector<2x32xf32>
    %cst_24 = arith.constant dense<0.000000e+00> : vector<2x32xf32>
    %35 = tpu.matmul %26, %6, %cst_24 {dimension_numbers = #tpu.dot_dimension_numbers<[1], [0], [0], [1], [0, 0, 1, 1], [], []>} : vector<2x32xf32>, vector<32x32xf32>, vector<2x32xf32> -> vector<2x32xf32>
    %36 = arith.addf %34, %35 : vector<2x32xf32>
    %cst_25 = arith.constant 0.000000e+00 : f32
    %37 = vector.broadcast %cst_25 : f32 to vector<2x32xf32>
    %38 = arith.maximumf %36, %37 : vector<2x32xf32>
    %39 = vector.extract_strided_slice %5 {offsets = [10, 32], sizes = [2, 32], strides = [1, 1]} : vector<16x64xf32> to vector<2x32xf32>
    %cst_26 = arith.constant dense<0.000000e+00> : vector<2x32xf32>
    %40 = tpu.matmul %31, %7, %cst_26 {dimension_numbers = #tpu.dot_dimension_numbers<[1], [0], [0], [1], [0, 0, 1, 1], [], []>} : vector<2x32xf32>, vector<32x32xf32>, vector<2x32xf32> -> vector<2x32xf32>
    %41 = arith.addf %39, %40 : vector<2x32xf32>
    %cst_27 = arith.constant 0.000000e+00 : f32
    %42 = vector.broadcast %cst_27 : f32 to vector<2x32xf32>
    %43 = arith.maximumf %41, %42 : vector<2x32xf32>
    %c4 = arith.constant 4 : index
    %c0_28 = arith.constant 0 : index
    %44 = vector.load %arg12[%c4, %c0_28] : memref<16x32xf32, #tpu.memory_space<vmem>>, vector<2x32xf32>
    tpu.vector_store %arg12[%c4, %c0_28], %38 {strides = array<i32>} : memref<16x32xf32, #tpu.memory_space<vmem>>, vector<2x32xf32>,
    %c10 = arith.constant 10 : index
    %c0_29 = arith.constant 0 : index
    %45 = vector.load %arg13[%c10, %c0_29] : memref<16x32xf32, #tpu.memory_space<vmem>>, vector<2x32xf32>
    tpu.vector_store %arg13[%c10, %c0_29], %43 {strides = array<i32>} : memref<16x32xf32, #tpu.memory_space<vmem>>, vector<2x32xf32>,
    %46 = vector.extract_strided_slice %5 {offsets = [6, 0], sizes = [2, 32], strides = [1, 1]} : vector<16x64xf32> to vector<2x32xf32>
    %cst_30 = arith.constant dense<0.000000e+00> : vector<2x32xf32>
    %47 = tpu.matmul %38, %6, %cst_30 {dimension_numbers = #tpu.dot_dimension_numbers<[1], [0], [0], [1], [0, 0, 1, 1], [], []>} : vector<2x32xf32>, vector<32x32xf32>, vector<2x32xf32> -> vector<2x32xf32>
    %48 = arith.addf %46, %47 : vector<2x32xf32>
    %cst_31 = arith.constant 0.000000e+00 : f32
    %49 = vector.broadcast %cst_31 : f32 to vector<2x32xf32>
    %50 = arith.maximumf %48, %49 : vector<2x32xf32>
    %51 = vector.extract_strided_slice %5 {offsets = [8, 32], sizes = [2, 32], strides = [1, 1]} : vector<16x64xf32> to vector<2x32xf32>
    %cst_32 = arith.constant dense<0.000000e+00> : vector<2x32xf32>
    %52 = tpu.matmul %43, %7, %cst_32 {dimension_numbers = #tpu.dot_dimension_numbers<[1], [0], [0], [1], [0, 0, 1, 1], [], []>} : vector<2x32xf32>, vector<32x32xf32>, vector<2x32xf32> -> vector<2x32xf32>
    %53 = arith.addf %51, %52 : vector<2x32xf32>
    %cst_33 = arith.constant 0.000000e+00 : f32
    %54 = vector.broadcast %cst_33 : f32 to vector<2x32xf32>
    %55 = arith.maximumf %53, %54 : vector<2x32xf32>
    %c6 = arith.constant 6 : index
    %c0_34 = arith.constant 0 : index
    %56 = vector.load %arg12[%c6, %c0_34] : memref<16x32xf32, #tpu.memory_space<vmem>>, vector<2x32xf32>
    tpu.vector_store %arg12[%c6, %c0_34], %50 {strides = array<i32>} : memref<16x32xf32, #tpu.memory_space<vmem>>, vector<2x32xf32>,
    %c8 = arith.constant 8 : index
    %c0_35 = arith.constant 0 : index
    %57 = vector.load %arg13[%c8, %c0_35] : memref<16x32xf32, #tpu.memory_space<vmem>>, vector<2x32xf32>
    tpu.vector_store %arg13[%c8, %c0_35], %55 {strides = array<i32>} : memref<16x32xf32, #tpu.memory_space<vmem>>, vector<2x32xf32>,
    %58 = vector.extract_strided_slice %5 {offsets = [8, 0], sizes = [2, 32], strides = [1, 1]} : vector<16x64xf32> to vector<2x32xf32>
    %cst_36 = arith.constant dense<0.000000e+00> : vector<2x32xf32>
    %59 = tpu.matmul %50, %6, %cst_36 {dimension_numbers = #tpu.dot_dimension_numbers<[1], [0], [0], [1], [0, 0, 1, 1], [], []>} : vector<2x32xf32>, vector<32x32xf32>, vector<2x32xf32> -> vector<2x32xf32>
    %60 = arith.addf %58, %59 : vector<2x32xf32>
    %cst_37 = arith.constant 0.000000e+00 : f32
    %61 = vector.broadcast %cst_37 : f32 to vector<2x32xf32>
    %62 = arith.maximumf %60, %61 : vector<2x32xf32>
    %63 = vector.extract_strided_slice %5 {offsets = [6, 32], sizes = [2, 32], strides = [1, 1]} : vector<16x64xf32> to vector<2x32xf32>
    %cst_38 = arith.constant dense<0.000000e+00> : vector<2x32xf32>
    %64 = tpu.matmul %55, %7, %cst_38 {dimension_numbers = #tpu.dot_dimension_numbers<[1], [0], [0], [1], [0, 0, 1, 1], [], []>} : vector<2x32xf32>, vector<32x32xf32>, vector<2x32xf32> -> vector<2x32xf32>
    %65 = arith.addf %63, %64 : vector<2x32xf32>
    %cst_39 = arith.constant 0.000000e+00 : f32
    %66 = vector.broadcast %cst_39 : f32 to vector<2x32xf32>
    %67 = arith.maximumf %65, %66 : vector<2x32xf32>
    %c8_40 = arith.constant 8 : index
    %c0_41 = arith.constant 0 : index
    %68 = vector.load %arg12[%c8_40, %c0_41] : memref<16x32xf32, #tpu.memory_space<vmem>>, vector<2x32xf32>
    tpu.vector_store %arg12[%c8_40, %c0_41], %62 {strides = array<i32>} : memref<16x32xf32, #tpu.memory_space<vmem>>, vector<2x32xf32>,
    %c6_42 = arith.constant 6 : index
    %c0_43 = arith.constant 0 : index
    %69 = vector.load %arg13[%c6_42, %c0_43] : memref<16x32xf32, #tpu.memory_space<vmem>>, vector<2x32xf32>
    tpu.vector_store %arg13[%c6_42, %c0_43], %67 {strides = array<i32>} : memref<16x32xf32, #tpu.memory_space<vmem>>, vector<2x32xf32>,
    %70 = vector.extract_strided_slice %5 {offsets = [10, 0], sizes = [2, 32], strides = [1, 1]} : vector<16x64xf32> to vector<2x32xf32>
    %cst_44 = arith.constant dense<0.000000e+00> : vector<2x32xf32>
    %71 = tpu.matmul %62, %6, %cst_44 {dimension_numbers = #tpu.dot_dimension_numbers<[1], [0], [0], [1], [0, 0, 1, 1], [], []>} : vector<2x32xf32>, vector<32x32xf32>, vector<2x32xf32> -> vector<2x32xf32>
    %72 = arith.addf %70, %71 : vector<2x32xf32>
    %cst_45 = arith.constant 0.000000e+00 : f32
    %73 = vector.broadcast %cst_45 : f32 to vector<2x32xf32>
    %74 = arith.maximumf %72, %73 : vector<2x32xf32>
    %75 = vector.extract_strided_slice %5 {offsets = [4, 32], sizes = [2, 32], strides = [1, 1]} : vector<16x64xf32> to vector<2x32xf32>
    %cst_46 = arith.constant dense<0.000000e+00> : vector<2x32xf32>
    %76 = tpu.matmul %67, %7, %cst_46 {dimension_numbers = #tpu.dot_dimension_numbers<[1], [0], [0], [1], [0, 0, 1, 1], [], []>} : vector<2x32xf32>, vector<32x32xf32>, vector<2x32xf32> -> vector<2x32xf32>
    %77 = arith.addf %75, %76 : vector<2x32xf32>
    %cst_47 = arith.constant 0.000000e+00 : f32
    %78 = vector.broadcast %cst_47 : f32 to vector<2x32xf32>
    %79 = arith.maximumf %77, %78 : vector<2x32xf32>
    %c10_48 = arith.constant 10 : index
    %c0_49 = arith.constant 0 : index
    %80 = vector.load %arg12[%c10_48, %c0_49] : memref<16x32xf32, #tpu.memory_space<vmem>>, vector<2x32xf32>
    tpu.vector_store %arg12[%c10_48, %c0_49], %74 {strides = array<i32>} : memref<16x32xf32, #tpu.memory_space<vmem>>, vector<2x32xf32>,
    %c4_50 = arith.constant 4 : index
    %c0_51 = arith.constant 0 : index
    %81 = vector.load %arg13[%c4_50, %c0_51] : memref<16x32xf32, #tpu.memory_space<vmem>>, vector<2x32xf32>
    tpu.vector_store %arg13[%c4_50, %c0_51], %79 {strides = array<i32>} : memref<16x32xf32, #tpu.memory_space<vmem>>, vector<2x32xf32>,
    %82 = vector.extract_strided_slice %5 {offsets = [12, 0], sizes = [2, 32], strides = [1, 1]} : vector<16x64xf32> to vector<2x32xf32>
    %cst_52 = arith.constant dense<0.000000e+00> : vector<2x32xf32>
    %83 = tpu.matmul %74, %6, %cst_52 {dimension_numbers = #tpu.dot_dimension_numbers<[1], [0], [0], [1], [0, 0, 1, 1], [], []>} : vector<2x32xf32>, vector<32x32xf32>, vector<2x32xf32> -> vector<2x32xf32>
    %84 = arith.addf %82, %83 : vector<2x32xf32>
    %cst_53 = arith.constant 0.000000e+00 : f32
    %85 = vector.broadcast %cst_53 : f32 to vector<2x32xf32>
    %86 = arith.maximumf %84, %85 : vector<2x32xf32>
    %87 = vector.extract_strided_slice %5 {offsets = [2, 32], sizes = [2, 32], strides = [1, 1]} : vector<16x64xf32> to vector<2x32xf32>
    %cst_54 = arith.constant dense<0.000000e+00> : vector<2x32xf32>
    %88 = tpu.matmul %79, %7, %cst_54 {dimension_numbers = #tpu.dot_dimension_numbers<[1], [0], [0], [1], [0, 0, 1, 1], [], []>} : vector<2x32xf32>, vector<32x32xf32>, vector<2x32xf32> -> vector<2x32xf32>
    %89 = arith.addf %87, %88 : vector<2x32xf32>
    %cst_55 = arith.constant 0.000000e+00 : f32
    %90 = vector.broadcast %cst_55 : f32 to vector<2x32xf32>
    %91 = arith.maximumf %89, %90 : vector<2x32xf32>
    %c12_56 = arith.constant 12 : index
    %c0_57 = arith.constant 0 : index
    %92 = vector.load %arg12[%c12_56, %c0_57] : memref<16x32xf32, #tpu.memory_space<vmem>>, vector<2x32xf32>
    tpu.vector_store %arg12[%c12_56, %c0_57], %86 {strides = array<i32>} : memref<16x32xf32, #tpu.memory_space<vmem>>, vector<2x32xf32>,
    %c2_58 = arith.constant 2 : index
    %c0_59 = arith.constant 0 : index
    %93 = vector.load %arg13[%c2_58, %c0_59] : memref<16x32xf32, #tpu.memory_space<vmem>>, vector<2x32xf32>
    tpu.vector_store %arg13[%c2_58, %c0_59], %91 {strides = array<i32>} : memref<16x32xf32, #tpu.memory_space<vmem>>, vector<2x32xf32>,
    %94 = vector.extract_strided_slice %5 {offsets = [14, 0], sizes = [2, 32], strides = [1, 1]} : vector<16x64xf32> to vector<2x32xf32>
    %cst_60 = arith.constant dense<0.000000e+00> : vector<2x32xf32>
    %95 = tpu.matmul %86, %6, %cst_60 {dimension_numbers = #tpu.dot_dimension_numbers<[1], [0], [0], [1], [0, 0, 1, 1], [], []>} : vector<2x32xf32>, vector<32x32xf32>, vector<2x32xf32> -> vector<2x32xf32>
    %96 = arith.addf %94, %95 : vector<2x32xf32>
    %cst_61 = arith.constant 0.000000e+00 : f32
    %97 = vector.broadcast %cst_61 : f32 to vector<2x32xf32>
    %98 = arith.maximumf %96, %97 : vector<2x32xf32>
    %99 = vector.extract_strided_slice %5 {offsets = [0, 32], sizes = [2, 32], strides = [1, 1]} : vector<16x64xf32> to vector<2x32xf32>
    %cst_62 = arith.constant dense<0.000000e+00> : vector<2x32xf32>
    %100 = tpu.matmul %91, %7, %cst_62 {dimension_numbers = #tpu.dot_dimension_numbers<[1], [0], [0], [1], [0, 0, 1, 1], [], []>} : vector<2x32xf32>, vector<32x32xf32>, vector<2x32xf32> -> vector<2x32xf32>
    %101 = arith.addf %99, %100 : vector<2x32xf32>
    %cst_63 = arith.constant 0.000000e+00 : f32
    %102 = vector.broadcast %cst_63 : f32 to vector<2x32xf32>
    %103 = arith.maximumf %101, %102 : vector<2x32xf32>
    %c14_64 = arith.constant 14 : index
    %c0_65 = arith.constant 0 : index
    %104 = vector.load %arg12[%c14_64, %c0_65] : memref<16x32xf32, #tpu.memory_space<vmem>>, vector<2x32xf32>
    tpu.vector_store %arg12[%c14_64, %c0_65], %98 {strides = array<i32>} : memref<16x32xf32, #tpu.memory_space<vmem>>, vector<2x32xf32>,
    %c0_66 = arith.constant 0 : index
    %c0_67 = arith.constant 0 : index
    %105 = vector.load %arg13[%c0_66, %c0_67] : memref<16x32xf32, #tpu.memory_space<vmem>>, vector<2x32xf32>
    tpu.vector_store %arg13[%c0_66, %c0_67], %103 {strides = array<i32>} : memref<16x32xf32, #tpu.memory_space<vmem>>, vector<2x32xf32>,
    %c0_68 = arith.constant 0 : index
    %c0_69 = arith.constant 0 : index
    %106 = vector.load %arg12[%c0_68, %c0_69] : memref<16x32xf32, #tpu.memory_space<vmem>>, vector<16x32xf32>
    %c0_70 = arith.constant 0 : index
    %c0_71 = arith.constant 0 : index
    %107 = vector.load %arg13[%c0_70, %c0_71] : memref<16x32xf32, #tpu.memory_space<vmem>>, vector<16x32xf32>
    %c0_72 = arith.constant 0 : index
    %c0_73 = arith.constant 0 : index
    %108 = vector.load %arg5[%c0_72, %c0_73] : memref<64x64xf32, #tpu.memory_space<vmem>>, vector<32x64xf32>
    %cst_74 = arith.constant dense<0.000000e+00> : vector<16x64xf32>
    %109 = tpu.matmul %106, %108, %cst_74 {dimension_numbers = #tpu.dot_dimension_numbers<[1], [0], [0], [1], [0, 0, 1, 1], [], []>} : vector<16x32xf32>, vector<32x64xf32>, vector<16x64xf32> -> vector<16x64xf32>
    %c32 = arith.constant 32 : index
    %c0_75 = arith.constant 0 : index
    %110 = vector.load %arg5[%c32, %c0_75] : memref<64x64xf32, #tpu.memory_space<vmem>>, vector<32x64xf32>
    %cst_76 = arith.constant dense<0.000000e+00> : vector<16x64xf32>
    %111 = tpu.matmul %107, %110, %cst_76 {dimension_numbers = #tpu.dot_dimension_numbers<[1], [0], [0], [1], [0, 0, 1, 1], [], []>} : vector<16x32xf32>, vector<32x64xf32>, vector<16x64xf32> -> vector<16x64xf32>
    %112 = arith.addf %109, %111 : vector<16x64xf32>
    %c0_77 = arith.constant 0 : index
    %c0_78 = arith.constant 0 : index
    %113 = vector.load %arg8[%c0_77, %c0_78] : memref<1x64xf32, #tpu.memory_space<vmem>>, vector<1x64xf32>
    %114 = vector.broadcast %113 : vector<1x64xf32> to vector<16x64xf32>
    %115 = arith.addf %112, %114 : vector<16x64xf32>
    %c0_79 = arith.constant 0 : index
    %c0_80 = arith.constant 0 : index
    %116 = vector.load %arg6[%c0_79, %c0_80] : memref<32x32xf32, #tpu.memory_space<vmem>>, vector<32x32xf32>
    %c0_81 = arith.constant 0 : index
    %c0_82 = arith.constant 0 : index
    %117 = vector.load %arg7[%c0_81, %c0_82] : memref<32x32xf32, #tpu.memory_space<vmem>>, vector<32x32xf32>
    %cst_83 = arith.constant 0.000000e+00 : f32
    %118 = vector.broadcast %cst_83 : f32 to vector<2x32xf32>
    %cst_84 = arith.constant 0.000000e+00 : f32
    %119 = vector.broadcast %cst_84 : f32 to vector<2x32xf32>
    %120 = vector.extract_strided_slice %115 {offsets = [0, 0], sizes = [2, 32], strides = [1, 1]} : vector<16x64xf32> to vector<2x32xf32>
    %cst_85 = arith.constant dense<0.000000e+00> : vector<2x32xf32>
    %121 = tpu.matmul %118, %116, %cst_85 {dimension_numbers = #tpu.dot_dimension_numbers<[1], [0], [0], [1], [0, 0, 1, 1], [], []>} : vector<2x32xf32>, vector<32x32xf32>, vector<2x32xf32> -> vector<2x32xf32>
    %122 = arith.addf %120, %121 : vector<2x32xf32>
    %cst_86 = arith.constant 0.000000e+00 : f32
    %123 = vector.broadcast %cst_86 : f32 to vector<2x32xf32>
    %124 = arith.maximumf %122, %123 : vector<2x32xf32>
    %125 = vector.extract_strided_slice %115 {offsets = [14, 32], sizes = [2, 32], strides = [1, 1]} : vector<16x64xf32> to vector<2x32xf32>
    %cst_87 = arith.constant dense<0.000000e+00> : vector<2x32xf32>
    %126 = tpu.matmul %119, %117, %cst_87 {dimension_numbers = #tpu.dot_dimension_numbers<[1], [0], [0], [1], [0, 0, 1, 1], [], []>} : vector<2x32xf32>, vector<32x32xf32>, vector<2x32xf32> -> vector<2x32xf32>
    %127 = arith.addf %125, %126 : vector<2x32xf32>
    %cst_88 = arith.constant 0.000000e+00 : f32
    %128 = vector.broadcast %cst_88 : f32 to vector<2x32xf32>
    %129 = arith.maximumf %127, %128 : vector<2x32xf32>
    %c0_89 = arith.constant 0 : index
    %c0_90 = arith.constant 0 : index
    %130 = vector.load %arg12[%c0_89, %c0_90] : memref<16x32xf32, #tpu.memory_space<vmem>>, vector<2x32xf32>
    tpu.vector_store %arg12[%c0_89, %c0_90], %124 {strides = array<i32>} : memref<16x32xf32, #tpu.memory_space<vmem>>, vector<2x32xf32>,
    %c14_91 = arith.constant 14 : index
    %c0_92 = arith.constant 0 : index
    %131 = vector.load %arg13[%c14_91, %c0_92] : memref<16x32xf32, #tpu.memory_space<vmem>>, vector<2x32xf32>
    tpu.vector_store %arg13[%c14_91, %c0_92], %129 {strides = array<i32>} : memref<16x32xf32, #tpu.memory_space<vmem>>, vector<2x32xf32>,
    %132 = vector.extract_strided_slice %115 {offsets = [2, 0], sizes = [2, 32], strides = [1, 1]} : vector<16x64xf32> to vector<2x32xf32>
    %cst_93 = arith.constant dense<0.000000e+00> : vector<2x32xf32>
    %133 = tpu.matmul %124, %116, %cst_93 {dimension_numbers = #tpu.dot_dimension_numbers<[1], [0], [0], [1], [0, 0, 1, 1], [], []>} : vector<2x32xf32>, vector<32x32xf32>, vector<2x32xf32> -> vector<2x32xf32>
    %134 = arith.addf %132, %133 : vector<2x32xf32>
    %cst_94 = arith.constant 0.000000e+00 : f32
    %135 = vector.broadcast %cst_94 : f32 to vector<2x32xf32>
    %136 = arith.maximumf %134, %135 : vector<2x32xf32>
    %137 = vector.extract_strided_slice %115 {offsets = [12, 32], sizes = [2, 32], strides = [1, 1]} : vector<16x64xf32> to vector<2x32xf32>
    %cst_95 = arith.constant dense<0.000000e+00> : vector<2x32xf32>
    %138 = tpu.matmul %129, %117, %cst_95 {dimension_numbers = #tpu.dot_dimension_numbers<[1], [0], [0], [1], [0, 0, 1, 1], [], []>} : vector<2x32xf32>, vector<32x32xf32>, vector<2x32xf32> -> vector<2x32xf32>
    %139 = arith.addf %137, %138 : vector<2x32xf32>
    %cst_96 = arith.constant 0.000000e+00 : f32
    %140 = vector.broadcast %cst_96 : f32 to vector<2x32xf32>
    %141 = arith.maximumf %139, %140 : vector<2x32xf32>
    %c2_97 = arith.constant 2 : index
    %c0_98 = arith.constant 0 : index
    %142 = vector.load %arg12[%c2_97, %c0_98] : memref<16x32xf32, #tpu.memory_space<vmem>>, vector<2x32xf32>
    tpu.vector_store %arg12[%c2_97, %c0_98], %136 {strides = array<i32>} : memref<16x32xf32, #tpu.memory_space<vmem>>, vector<2x32xf32>,
    %c12_99 = arith.constant 12 : index
    %c0_100 = arith.constant 0 : index
    %143 = vector.load %arg13[%c12_99, %c0_100] : memref<16x32xf32, #tpu.memory_space<vmem>>, vector<2x32xf32>
    tpu.vector_store %arg13[%c12_99, %c0_100], %141 {strides = array<i32>} : memref<16x32xf32, #tpu.memory_space<vmem>>, vector<2x32xf32>,
    %144 = vector.extract_strided_slice %115 {offsets = [4, 0], sizes = [2, 32], strides = [1, 1]} : vector<16x64xf32> to vector<2x32xf32>
    %cst_101 = arith.constant dense<0.000000e+00> : vector<2x32xf32>
    %145 = tpu.matmul %136, %116, %cst_101 {dimension_numbers = #tpu.dot_dimension_numbers<[1], [0], [0], [1], [0, 0, 1, 1], [], []>} : vector<2x32xf32>, vector<32x32xf32>, vector<2x32xf32> -> vector<2x32xf32>
    %146 = arith.addf %144, %145 : vector<2x32xf32>
    %cst_102 = arith.constant 0.000000e+00 : f32
    %147 = vector.broadcast %cst_102 : f32 to vector<2x32xf32>
    %148 = arith.maximumf %146, %147 : vector<2x32xf32>
    %149 = vector.extract_strided_slice %115 {offsets = [10, 32], sizes = [2, 32], strides = [1, 1]} : vector<16x64xf32> to vector<2x32xf32>
    %cst_103 = arith.constant dense<0.000000e+00> : vector<2x32xf32>
    %150 = tpu.matmul %141, %117, %cst_103 {dimension_numbers = #tpu.dot_dimension_numbers<[1], [0], [0], [1], [0, 0, 1, 1], [], []>} : vector<2x32xf32>, vector<32x32xf32>, vector<2x32xf32> -> vector<2x32xf32>
    %151 = arith.addf %149, %150 : vector<2x32xf32>
    %cst_104 = arith.constant 0.000000e+00 : f32
    %152 = vector.broadcast %cst_104 : f32 to vector<2x32xf32>
    %153 = arith.maximumf %151, %152 : vector<2x32xf32>
    %c4_105 = arith.constant 4 : index
    %c0_106 = arith.constant 0 : index
    %154 = vector.load %arg12[%c4_105, %c0_106] : memref<16x32xf32, #tpu.memory_space<vmem>>, vector<2x32xf32>
    tpu.vector_store %arg12[%c4_105, %c0_106], %148 {strides = array<i32>} : memref<16x32xf32, #tpu.memory_space<vmem>>, vector<2x32xf32>,
    %c10_107 = arith.constant 10 : index
    %c0_108 = arith.constant 0 : index
    %155 = vector.load %arg13[%c10_107, %c0_108] : memref<16x32xf32, #tpu.memory_space<vmem>>, vector<2x32xf32>
    tpu.vector_store %arg13[%c10_107, %c0_108], %153 {strides = array<i32>} : memref<16x32xf32, #tpu.memory_space<vmem>>, vector<2x32xf32>,
    %156 = vector.extract_strided_slice %115 {offsets = [6, 0], sizes = [2, 32], strides = [1, 1]} : vector<16x64xf32> to vector<2x32xf32>
    %cst_109 = arith.constant dense<0.000000e+00> : vector<2x32xf32>
    %157 = tpu.matmul %148, %116, %cst_109 {dimension_numbers = #tpu.dot_dimension_numbers<[1], [0], [0], [1], [0, 0, 1, 1], [], []>} : vector<2x32xf32>, vector<32x32xf32>, vector<2x32xf32> -> vector<2x32xf32>
    %158 = arith.addf %156, %157 : vector<2x32xf32>
    %cst_110 = arith.constant 0.000000e+00 : f32
    %159 = vector.broadcast %cst_110 : f32 to vector<2x32xf32>
    %160 = arith.maximumf %158, %159 : vector<2x32xf32>
    %161 = vector.extract_strided_slice %115 {offsets = [8, 32], sizes = [2, 32], strides = [1, 1]} : vector<16x64xf32> to vector<2x32xf32>
    %cst_111 = arith.constant dense<0.000000e+00> : vector<2x32xf32>
    %162 = tpu.matmul %153, %117, %cst_111 {dimension_numbers = #tpu.dot_dimension_numbers<[1], [0], [0], [1], [0, 0, 1, 1], [], []>} : vector<2x32xf32>, vector<32x32xf32>, vector<2x32xf32> -> vector<2x32xf32>
    %163 = arith.addf %161, %162 : vector<2x32xf32>
    %cst_112 = arith.constant 0.000000e+00 : f32
    %164 = vector.broadcast %cst_112 : f32 to vector<2x32xf32>
    %165 = arith.maximumf %163, %164 : vector<2x32xf32>
    %c6_113 = arith.constant 6 : index
    %c0_114 = arith.constant 0 : index
    %166 = vector.load %arg12[%c6_113, %c0_114] : memref<16x32xf32, #tpu.memory_space<vmem>>, vector<2x32xf32>
    tpu.vector_store %arg12[%c6_113, %c0_114], %160 {strides = array<i32>} : memref<16x32xf32, #tpu.memory_space<vmem>>, vector<2x32xf32>,
    %c8_115 = arith.constant 8 : index
    %c0_116 = arith.constant 0 : index
    %167 = vector.load %arg13[%c8_115, %c0_116] : memref<16x32xf32, #tpu.memory_space<vmem>>, vector<2x32xf32>
    tpu.vector_store %arg13[%c8_115, %c0_116], %165 {strides = array<i32>} : memref<16x32xf32, #tpu.memory_space<vmem>>, vector<2x32xf32>,
    %168 = vector.extract_strided_slice %115 {offsets = [8, 0], sizes = [2, 32], strides = [1, 1]} : vector<16x64xf32> to vector<2x32xf32>
    %cst_117 = arith.constant dense<0.000000e+00> : vector<2x32xf32>
    %169 = tpu.matmul %160, %116, %cst_117 {dimension_numbers = #tpu.dot_dimension_numbers<[1], [0], [0], [1], [0, 0, 1, 1], [], []>} : vector<2x32xf32>, vector<32x32xf32>, vector<2x32xf32> -> vector<2x32xf32>
    %170 = arith.addf %168, %169 : vector<2x32xf32>
    %cst_118 = arith.constant 0.000000e+00 : f32
    %171 = vector.broadcast %cst_118 : f32 to vector<2x32xf32>
    %172 = arith.maximumf %170, %171 : vector<2x32xf32>
    %173 = vector.extract_strided_slice %115 {offsets = [6, 32], sizes = [2, 32], strides = [1, 1]} : vector<16x64xf32> to vector<2x32xf32>
    %cst_119 = arith.constant dense<0.000000e+00> : vector<2x32xf32>
    %174 = tpu.matmul %165, %117, %cst_119 {dimension_numbers = #tpu.dot_dimension_numbers<[1], [0], [0], [1], [0, 0, 1, 1], [], []>} : vector<2x32xf32>, vector<32x32xf32>, vector<2x32xf32> -> vector<2x32xf32>
    %175 = arith.addf %173, %174 : vector<2x32xf32>
    %cst_120 = arith.constant 0.000000e+00 : f32
    %176 = vector.broadcast %cst_120 : f32 to vector<2x32xf32>
    %177 = arith.maximumf %175, %176 : vector<2x32xf32>
    %c8_121 = arith.constant 8 : index
    %c0_122 = arith.constant 0 : index
    %178 = vector.load %arg12[%c8_121, %c0_122] : memref<16x32xf32, #tpu.memory_space<vmem>>, vector<2x32xf32>
    tpu.vector_store %arg12[%c8_121, %c0_122], %172 {strides = array<i32>} : memref<16x32xf32, #tpu.memory_space<vmem>>, vector<2x32xf32>,
    %c6_123 = arith.constant 6 : index
    %c0_124 = arith.constant 0 : index
    %179 = vector.load %arg13[%c6_123, %c0_124] : memref<16x32xf32, #tpu.memory_space<vmem>>, vector<2x32xf32>
    tpu.vector_store %arg13[%c6_123, %c0_124], %177 {strides = array<i32>} : memref<16x32xf32, #tpu.memory_space<vmem>>, vector<2x32xf32>,
    %180 = vector.extract_strided_slice %115 {offsets = [10, 0], sizes = [2, 32], strides = [1, 1]} : vector<16x64xf32> to vector<2x32xf32>
    %cst_125 = arith.constant dense<0.000000e+00> : vector<2x32xf32>
    %181 = tpu.matmul %172, %116, %cst_125 {dimension_numbers = #tpu.dot_dimension_numbers<[1], [0], [0], [1], [0, 0, 1, 1], [], []>} : vector<2x32xf32>, vector<32x32xf32>, vector<2x32xf32> -> vector<2x32xf32>
    %182 = arith.addf %180, %181 : vector<2x32xf32>
    %cst_126 = arith.constant 0.000000e+00 : f32
    %183 = vector.broadcast %cst_126 : f32 to vector<2x32xf32>
    %184 = arith.maximumf %182, %183 : vector<2x32xf32>
    %185 = vector.extract_strided_slice %115 {offsets = [4, 32], sizes = [2, 32], strides = [1, 1]} : vector<16x64xf32> to vector<2x32xf32>
    %cst_127 = arith.constant dense<0.000000e+00> : vector<2x32xf32>
    %186 = tpu.matmul %177, %117, %cst_127 {dimension_numbers = #tpu.dot_dimension_numbers<[1], [0], [0], [1], [0, 0, 1, 1], [], []>} : vector<2x32xf32>, vector<32x32xf32>, vector<2x32xf32> -> vector<2x32xf32>
    %187 = arith.addf %185, %186 : vector<2x32xf32>
    %cst_128 = arith.constant 0.000000e+00 : f32
    %188 = vector.broadcast %cst_128 : f32 to vector<2x32xf32>
    %189 = arith.maximumf %187, %188 : vector<2x32xf32>
    %c10_129 = arith.constant 10 : index
    %c0_130 = arith.constant 0 : index
    %190 = vector.load %arg12[%c10_129, %c0_130] : memref<16x32xf32, #tpu.memory_space<vmem>>, vector<2x32xf32>
    tpu.vector_store %arg12[%c10_129, %c0_130], %184 {strides = array<i32>} : memref<16x32xf32, #tpu.memory_space<vmem>>, vector<2x32xf32>,
    %c4_131 = arith.constant 4 : index
    %c0_132 = arith.constant 0 : index
    %191 = vector.load %arg13[%c4_131, %c0_132] : memref<16x32xf32, #tpu.memory_space<vmem>>, vector<2x32xf32>
    tpu.vector_store %arg13[%c4_131, %c0_132], %189 {strides = array<i32>} : memref<16x32xf32, #tpu.memory_space<vmem>>, vector<2x32xf32>,
    %192 = vector.extract_strided_slice %115 {offsets = [12, 0], sizes = [2, 32], strides = [1, 1]} : vector<16x64xf32> to vector<2x32xf32>
    %cst_133 = arith.constant dense<0.000000e+00> : vector<2x32xf32>
    %193 = tpu.matmul %184, %116, %cst_133 {dimension_numbers = #tpu.dot_dimension_numbers<[1], [0], [0], [1], [0, 0, 1, 1], [], []>} : vector<2x32xf32>, vector<32x32xf32>, vector<2x32xf32> -> vector<2x32xf32>
    %194 = arith.addf %192, %193 : vector<2x32xf32>
    %cst_134 = arith.constant 0.000000e+00 : f32
    %195 = vector.broadcast %cst_134 : f32 to vector<2x32xf32>
    %196 = arith.maximumf %194, %195 : vector<2x32xf32>
    %197 = vector.extract_strided_slice %115 {offsets = [2, 32], sizes = [2, 32], strides = [1, 1]} : vector<16x64xf32> to vector<2x32xf32>
    %cst_135 = arith.constant dense<0.000000e+00> : vector<2x32xf32>
    %198 = tpu.matmul %189, %117, %cst_135 {dimension_numbers = #tpu.dot_dimension_numbers<[1], [0], [0], [1], [0, 0, 1, 1], [], []>} : vector<2x32xf32>, vector<32x32xf32>, vector<2x32xf32> -> vector<2x32xf32>
    %199 = arith.addf %197, %198 : vector<2x32xf32>
    %cst_136 = arith.constant 0.000000e+00 : f32
    %200 = vector.broadcast %cst_136 : f32 to vector<2x32xf32>
    %201 = arith.maximumf %199, %200 : vector<2x32xf32>
    %c12_137 = arith.constant 12 : index
    %c0_138 = arith.constant 0 : index
    %202 = vector.load %arg12[%c12_137, %c0_138] : memref<16x32xf32, #tpu.memory_space<vmem>>, vector<2x32xf32>
    tpu.vector_store %arg12[%c12_137, %c0_138], %196 {strides = array<i32>} : memref<16x32xf32, #tpu.memory_space<vmem>>, vector<2x32xf32>,
    %c2_139 = arith.constant 2 : index
    %c0_140 = arith.constant 0 : index
    %203 = vector.load %arg13[%c2_139, %c0_140] : memref<16x32xf32, #tpu.memory_space<vmem>>, vector<2x32xf32>
    tpu.vector_store %arg13[%c2_139, %c0_140], %201 {strides = array<i32>} : memref<16x32xf32, #tpu.memory_space<vmem>>, vector<2x32xf32>,
    %204 = vector.extract_strided_slice %115 {offsets = [14, 0], sizes = [2, 32], strides = [1, 1]} : vector<16x64xf32> to vector<2x32xf32>
    %cst_141 = arith.constant dense<0.000000e+00> : vector<2x32xf32>
    %205 = tpu.matmul %196, %116, %cst_141 {dimension_numbers = #tpu.dot_dimension_numbers<[1], [0], [0], [1], [0, 0, 1, 1], [], []>} : vector<2x32xf32>, vector<32x32xf32>, vector<2x32xf32> -> vector<2x32xf32>
    %206 = arith.addf %204, %205 : vector<2x32xf32>
    %cst_142 = arith.constant 0.000000e+00 : f32
    %207 = vector.broadcast %cst_142 : f32 to vector<2x32xf32>
    %208 = arith.maximumf %206, %207 : vector<2x32xf32>
    %209 = vector.extract_strided_slice %115 {offsets = [0, 32], sizes = [2, 32], strides = [1, 1]} : vector<16x64xf32> to vector<2x32xf32>
    %cst_143 = arith.constant dense<0.000000e+00> : vector<2x32xf32>
    %210 = tpu.matmul %201, %117, %cst_143 {dimension_numbers = #tpu.dot_dimension_numbers<[1], [0], [0], [1], [0, 0, 1, 1], [], []>} : vector<2x32xf32>, vector<32x32xf32>, vector<2x32xf32> -> vector<2x32xf32>
    %211 = arith.addf %209, %210 : vector<2x32xf32>
    %cst_144 = arith.constant 0.000000e+00 : f32
    %212 = vector.broadcast %cst_144 : f32 to vector<2x32xf32>
    %213 = arith.maximumf %211, %212 : vector<2x32xf32>
    %c14_145 = arith.constant 14 : index
    %c0_146 = arith.constant 0 : index
    %214 = vector.load %arg12[%c14_145, %c0_146] : memref<16x32xf32, #tpu.memory_space<vmem>>, vector<2x32xf32>
    tpu.vector_store %arg12[%c14_145, %c0_146], %208 {strides = array<i32>} : memref<16x32xf32, #tpu.memory_space<vmem>>, vector<2x32xf32>,
    %c0_147 = arith.constant 0 : index
    %c0_148 = arith.constant 0 : index
    %215 = vector.load %arg13[%c0_147, %c0_148] : memref<16x32xf32, #tpu.memory_space<vmem>>, vector<2x32xf32>
    tpu.vector_store %arg13[%c0_147, %c0_148], %213 {strides = array<i32>} : memref<16x32xf32, #tpu.memory_space<vmem>>, vector<2x32xf32>,
    %c0_149 = arith.constant 0 : index
    %c0_150 = arith.constant 0 : index
    %216 = vector.load %arg12[%c0_149, %c0_150] : memref<16x32xf32, #tpu.memory_space<vmem>>, vector<16x32xf32>
    %c0_151 = arith.constant 0 : index
    %c0_152 = arith.constant 0 : index
    %217 = vector.load %arg13[%c0_151, %c0_152] : memref<16x32xf32, #tpu.memory_space<vmem>>, vector<16x32xf32>
    %c0_153 = arith.constant 0 : index
    %c0_154 = arith.constant 0 : index
    %218 = vector.load %arg9[%c0_153, %c0_154] : memref<1x64xf32, #tpu.memory_space<vmem>>, vector<1x32xf32>
    %cst_155 = arith.constant dense<0.000000e+00> : vector<1x16xf32>
    %219 = tpu.matmul %218, %216, %cst_155 {dimension_numbers = #tpu.dot_dimension_numbers<[1], [1], [0], [0], [0, 0, 1, 0], [], []>} : vector<1x32xf32>, vector<16x32xf32>, vector<1x16xf32> -> vector<1x16xf32>
    %c0_156 = arith.constant 0 : index
    %c32_157 = arith.constant 32 : index
    %220 = vector.load %arg9[%c0_156, %c32_157] : memref<1x64xf32, #tpu.memory_space<vmem>>, vector<1x32xf32>
    %cst_158 = arith.constant dense<0.000000e+00> : vector<1x16xf32>
    %221 = tpu.matmul %220, %217, %cst_158 {dimension_numbers = #tpu.dot_dimension_numbers<[1], [1], [0], [0], [0, 0, 1, 0], [], []>} : vector<1x32xf32>, vector<16x32xf32>, vector<1x16xf32> -> vector<1x16xf32>
    %222 = arith.addf %219, %221 : vector<1x16xf32>
    %c0_159 = arith.constant 0 : index
    %c0_160 = arith.constant 0 : index
    %223 = vector.load %arg10[%c0_159, %c0_160] : memref<1x1xf32, #tpu.memory_space<vmem>>, vector<1x1xf32>
    %224 = vector.broadcast %223 : vector<1x1xf32> to vector<1x16xf32>
    %225 = arith.addf %222, %224 : vector<1x16xf32>
    %cst_161 = arith.constant 0.000000e+00 : f32
    %226 = vector.broadcast %cst_161 : f32 to vector<1x16xf32>
    %227 = arith.subf %226, %225 : vector<1x16xf32>
    %228 = math.exp %227 : vector<1x16xf32>
    %cst_162 = arith.constant 1.000000e+00 : f32
    %229 = vector.broadcast %cst_162 : f32 to vector<1x16xf32>
    %230 = arith.addf %229, %228 : vector<1x16xf32>
    %cst_163 = arith.constant 1.000000e+00 : f32
    %231 = vector.broadcast %cst_163 : f32 to vector<1x16xf32>
    %232 = arith.divf %231, %230 : vector<1x16xf32>
    %233 = arith.cmpf one, %232, %232 : vector<1x16xf32>
    %cst_164 = arith.constant 0.000000e+00 : f32
    %234 = vector.broadcast %cst_164 : f32 to vector<1x16xf32>
    %235 = arith.select %233, %234, %232 : vector<1x16xi1>, vector<1x16xf32>
    %c0_165 = arith.constant 0 : index
    %c0_166 = arith.constant 0 : index
    %236 = vector.load %arg11[%c0_165, %c0_166] : memref<1x16xf32, #tpu.memory_space<vmem>>, vector<1x16xf32>
    tpu.vector_store %arg11[%c0_165, %c0_166], %235 {strides = array<i32>} : memref<1x16xf32, #tpu.memory_space<vmem>>, vector<1x16xf32>,
    return
  }
}

</mosaic_0001>

<bundles_post_ra>
// kernel: recreated_model_forward.1
= control target key start
LH: loop header
LB: loop body
LE: loop exit
PB: predicated region body
PF: predicated region fallthrough
CT: control target
= control target key end

     0   :  { %s4685_s0 = inlined_call_operand.vmem [shape: f32[16,16], index: 0, kind: input, shape index: {}]   ;;  %s4686_s1 = inlined_call_operand.hbm [shape: f32[16,64], index: 1, kind: input, shape index: {}]   ;;  %s4687_s2 = inlined_call_operand.vmem [shape: f32[32,32], index: 2, kind: input, shape index: {}]   ;;  %s4688_s3 = inlined_call_operand.hbm [shape: f32[32,32], index: 3, kind: input, shape index: {}]   ;;  %s4689_s4 = inlined_call_operand.vmem [shape: f32[1,64], index: 4, kind: input, shape index: {}]   ;;  %s4690_s5 = inlined_call_operand.hbm [shape: f32[64,64], index: 5, kind: input, shape index: {}]   ;;  %s4691_s6 = inlined_call_operand.hbm [shape: f32[32,32], index: 6, kind: input, shape index: {}]   ;;  %s4692_s7 = inlined_call_operand.hbm [shape: f32[32,32], index: 7, kind: input, shape index: {}]   ;;  %s4693_s8 = inlined_call_operand.vmem [shape: f32[1,64], index: 8, kind: input, shape index: {}]   ;;  %s4694_s9 = inlined_call_operand.vmem [shape: f32[1,64], index: 9, kind: input, shape index: {}]   ;;  %s4695_s10 = inlined_call_operand.<no memory space> [shape: f32[1,1], index: 10, kind: input, shape index: {}]   ;;  %s4696_s11 = inlined_call_operand.vmem [shape: f32[1,16], index: 11, kind: output, shape index: {}]  }
   0x1   :  { %v16_v0 = vstv %s4695_s10 }
   0x2   :  { %17 = vst [vmem:[#allocation4] sm:$0x1] %v16_v0 }
   0x3   :  { %18 = vsyncpa [#allocation6], 0 }
   0x4   :  { %19 = vsyncpa [#allocation8], 0 }
   0x5   :  { %20 = vsyncpa [#allocation11], 0  ;;  %s3975_s19 = smov [#allocation7]   ;;  %s3976_s21 = smov [#allocation10]  }
   0x6   :  { %s42_s20 = sshll.u32 %s3975_s19, 4  ;;  %s68_s22 = sshll.u32 %s3976_s21, 4  ;;  %s43_s20 = int_to_ptr.vmem [resolvable:$true] %s42_s20  ;;  %s69_s22 = int_to_ptr.vmem [resolvable:$true] %s68_s22 }
   0x7   :  { %s3877_s23 = scalar_lea.vmem %s43_s20, 512  ;;  %p3882_p1 = scmp.lt.s32.totalorder %s43_s20, %s43_s20 }
   0x8   :  { %p3878_p0 = scmp.ne.s32.totalorder %s43_s20, %s3877_s23  ;;  %p3883_p2 = scmp.lt.s32.totalorder %s3877_s23, %s3877_s23 }
   0xa   :  { %p3884_p3 = por %p3883_p2, %p3882_p1 }
   0xc   :  { %p3885_p4 = pnand %p3884_p3, %p3878_p0 }
   0xe   :  { %3888 = shalt.err (!%p3885_p4)
}
   0xf   :  { %s3977_s24 = smov 128   ;;  %s3978_s25 = smov 8  }
  0x10   :  { %48 = dma.hbm_to_vmem [thread:$0]  %s4688_s3, 512, %s43_s20, [#allocation8], %s3977_s24, %s3977_s24, %s3978_s25  }
  0x11   :  { %s3897_s27 = scalar_lea.vmem %s69_s22, 512  ;;  %p3902_p6 = scmp.lt.s32.totalorder %s69_s22, %s69_s22 }
  0x12   :  { %p3898_p5 = scmp.ne.s32.totalorder %s69_s22, %s3897_s27  ;;  %p3903_p7 = scmp.lt.s32.totalorder %s3897_s27, %s3897_s27 }
  0x14   :  { %p3904_p8 = por %p3903_p7, %p3902_p6 }
  0x16   :  { %p3905_p9 = pnand %p3904_p8, %p3898_p5 }
  0x18   :  { %3908 = shalt.err (!%p3905_p9)
}
  0x19   :  { %74 = dma.hbm_to_vmem [thread:$0]  %s4691_s6, 512, %s69_s22, [#allocation11], %s3977_s24, %s3977_s24, %s3978_s25  }
  0x1a   :  { %s3979_s30 = smov [#allocation5]   ;;  %s3980_s13 = smov [#allocation9]  }
  0x1b   :  { %s28_s12 = sshll.u32 %s3979_s30, 4  ;;  %s56_s14 = sshll.u32 %s3980_s13, 4  ;;  %s29_s12 = int_to_ptr.vmem [resolvable:$true] %s28_s12  ;;  %s57_s14 = int_to_ptr.vmem [resolvable:$true] %s56_s14 }
  0x1c   :  { %s3917_s3 = scalar_lea.vmem %s29_s12, 256  ;;  %p3922_p11 = scmp.lt.s32.totalorder %s29_s12, %s29_s12 }
  0x1d   :  { %p3918_p10 = scmp.ne.s32.totalorder %s29_s12, %s3917_s3  ;;  %p3923_p12 = scmp.lt.s32.totalorder %s3917_s3, %s3917_s3 }
  0x1f   :  { %p3924_p13 = por %p3923_p12, %p3922_p11 }
  0x21   :  { %p3925_p0 = pnand %p3924_p13, %p3918_p10 }
  0x23   :  { %3928 = shalt.err (!%p3925_p0)
}
  0x24   :  { %34 = dma.hbm_to_vmem [thread:$0]  %s4686_s1, 256, %s29_s12, [#allocation6], %s3977_s24, %s3977_s24, %s3978_s25  }
  0x25   :  { %s3937_s6 = scalar_lea.vmem %s57_s14, 1024  ;;  %p3942_p2 = scmp.lt.s32.totalorder %s57_s14, %s57_s14 }
  0x26   :  { %p3938_p1 = scmp.ne.s32.totalorder %s57_s14, %s3937_s6  ;;  %p3943_p3 = scmp.lt.s32.totalorder %s3937_s6, %s3937_s6 }
  0x28   :  { %p3944_p4 = por %p3943_p3, %p3942_p2 }
  0x2a   :  { %p3945_p5 = pnand %p3944_p4, %p3938_p1 }
  0x2c   :  { %3948 = shalt.err (!%p3945_p5)
}
  0x2d   :  { %62 = dma.hbm_to_vmem [thread:$0]  %s4690_s5, 1024, %s57_s14, [#allocation8], %s3977_s24, %s3977_s24, %s3978_s25  }
  0x2e   :  { %s3981_s19 = smov [#allocation12]  }
  0x2f   :  { %s80_s20 = sshll.u32 %s3981_s19, 4  ;;  %s81_s20 = int_to_ptr.vmem [resolvable:$true] %s80_s20 }
  0x30   :  { %s3957_s21 = scalar_lea.vmem %s81_s20, 512  ;;  %p3962_p7 = scmp.lt.s32.totalorder %s81_s20, %s81_s20 }
  0x31   :  { %p3958_p6 = scmp.ne.s32.totalorder %s81_s20, %s3957_s21  ;;  %p3963_p8 = scmp.lt.s32.totalorder %s3957_s21, %s3957_s21 }
  0x33   :  { %p3964_p9 = por %p3963_p8, %p3962_p7 }
  0x35   :  { %p3965_p10 = pnand %p3964_p9, %p3958_p6 }
  0x37   :  { %3968 = shalt.err (!%p3965_p10)
}
  0x38   :  { %86 = dma.hbm_to_vmem [thread:$0]  %s4692_s7, 512, %s81_s20, [#allocation11], %s3977_s24, %s3977_s24, %s3978_s25  }
  0x39   :  { %3969 = dma.done.wait [#allocation6], 256  }
  0x3a   :  { %3970 = vsyncadd [#allocation6], 4294967040 }
  0x3b   :  { %3971 = dma.done.wait [#allocation8], 1536  }
  0x3c   :  { %3972 = vsyncadd [#allocation8], 4294965760 }
  0x3d   :  { %3973 = dma.done.wait [#allocation11], 1024  }
  0x3e   :  { %3974 = vsyncadd [#allocation11], 4294966272  ;;  %v3982_v1 = vmov 0.0   ;;  %vm3983_vm0 = vmmov 0   ;;  %v111_v2 = vld [vmem:[#allocation5 + $0x8] sm:$0xff]  ;;  %v4086_v3 = vld [vmem:[%s4687_s2 + $0x18] sm:$0xff] }
  0x3f   :  { %3463 = vmatprep.subr.mxu1 %v3982_v1  ;;  %3471 = vmatprep.mubr.msk.f32.mxu1 %vm3983_vm0, %v3982_v1  ;;  %v110_v4 = vld [vmem:[#allocation5] sm:$0xff]  ;;  %vm119_vm1 = vcmask 130048   ;;  %v4095_v6 = vld [vmem:[%s4687_s2 + $0x10] sm:$0xff]  ;;  %v4123_v12 = vld [vmem:[#allocation7 + $0x8] sm:$0xff]  ;;  %vm362_vm2 = vcmask 254976   ;;  %vm209_vm3 = vcmask 261120  }
  0x40   :  { %3456 = vmatprep.subr.mxu0 %v111_v2  ;;  %3464 = vmatpush3.msra.mxu1 %v4086_v3  ;;  %v108_v5 = vld [vmem:[%s4685_s0] sm:$0xff]  ;;  %v109_v7 = vld [vmem:[%s4685_s0 + $0x8] sm:$0xff]  ;;  %v4128_v13 = vld [vmem:[#allocation7] sm:$0xff]  ;;  %s3985_s13 = smov 96   ;;  %vm530_vm4 = vcmask 257026   ;;  %vm536_vm5 = vcmask 259076  }
  0x41   :  { %3457 = vmatpush3.msra.mxu0 %v111_v2  ;;  %3465 = vmatprep.subr.mxu1 %v3982_v1  ;;  %v4104_v8 = vld [vmem:[%s4687_s2 + $0x8] sm:$0xff]  ;;  %v4113_v10 = vld [vmem:[%s4687_s2] sm:$0xff]  ;;  %vm368_vm6 = vcmask 261126   ;;  %vm3223_vm7 = vcmask 122880  }
  0x42   :  { %3458 = vmatprep.subr.mxu0 %v110_v4  ;;  %3460 = vmatprep.mubr.msk.f32.mxu0 %vm119_vm1, %v108_v5  ;;  %v4107_v9 = vld [vmem:[#allocation7 + $0x18] sm:$0xff]  ;;  %v4117_v11 = vld [vmem:[#allocation7 + $0x10] sm:$0xff]  ;;  %v3232_v14 = vld [vmem:[%s4689_s4] ss:$0 sm:$0xff]  ;;  %s3984_s4 = smov 32  }
  0x43   :  { %3459 = vmatpush3.msra.mxu0 %v110_v4  ;;  %3466 = vmatpush3.msra.mxu1 %v4095_v6 }
  0x44   :  { %3461 = vmatmul.mubr.msk.f32.vlgmr.msra.gmra.mxu0 %vm119_vm1, %v109_v7  ;;  %3467 = vmatprep.subr.mxu1 %v3982_v1 }
  0x45   :  { %3474 = vmatprep.subr.mxu0 %v3982_v1  ;;  %3468 = vmatpush3.msra.mxu1 %v4104_v8 }
  0x46   :  { %3475 = vmatpush3.msra.mxu0 %v4107_v9  ;;  %3469 = vmatprep.subr.mxu1 %v3982_v1 }
  0x47   :  { %3476 = vmatprep.subr.mxu0 %v3982_v1  ;;  %3470 = vmatpush3.msra.mxu1 %v4113_v10 }
  0x48   :  { %3477 = vmatpush3.msra.mxu0 %v4117_v11  ;;  %3472 = vmatmul.mubr.f32.vlgmr.msra.gmra.mxu1 %v3982_v1 }
  0x49   :  { %3478 = vmatprep.subr.mxu0 %v3982_v1  ;;  %3482 = vmatprep.mubr.msk.f32.mxu0 %vm3983_vm0, %v3982_v1 }
  0x4a   :  { %3479 = vmatpush3.msra.mxu0 %v4123_v12  ;;  %3485 = vmatprep.subr.mxu1 %v3982_v1 }
  0x4b   :  { %3480 = vmatprep.subr.mxu0 %v3982_v1  ;;  %3486 = vmatpush3.msra.mxu1 %v4086_v3 }
  0x4c   :  { %3481 = vmatpush3.msra.mxu0 %v4128_v13  ;;  %3487 = vmatprep.subr.mxu1 %v3982_v1 }
  0x4d   :  { %3483 = vmatmul.mubr.f32.vlgmr.msra.gmra.mxu0 %v3982_v1  ;;  %3488 = vmatpush3.msra.mxu1 %v4095_v6 }
  0x4e   :  { %3489 = vmatprep.subr.mxu1 %v3982_v1  ;;  %3493 = vmatprep.mubr.msk.f32.mxu1 %vm3983_vm0, %v3982_v1 }
  0x4f   :  { %3490 = vmatpush3.msra.mxu1 %v4104_v8  ;;  %3496 = vmatprep.subr.mxu0 %v3982_v1 }
  0x50   :  { %3491 = vmatprep.subr.mxu1 %v3982_v1  ;;  %3497 = vmatpush3.msra.mxu0 %v4107_v9 }
  0x51   :  { %3492 = vmatpush3.msra.mxu1 %v4113_v10  ;;  %3498 = vmatprep.subr.mxu0 %v3982_v1 }
  0x52   :  { %3507 = vmatprep.subr.mxu1 %v3982_v1  ;;  %3499 = vmatpush3.msra.mxu0 %v4117_v11 }
  0x53   :  { %3500 = vmatprep.subr.mxu0 %v3982_v1  ;;  %3504 = vmatprep.mubr.msk.f32.mxu0 %vm3983_vm0, %v3982_v1 }
  0x54   :  { %3501 = vmatpush3.msra.mxu0 %v4123_v12 }
  0x55   :  { %3502 = vmatprep.subr.mxu0 %v3982_v1 }
  0x56   :  { %3503 = vmatpush3.msra.mxu0 %v4128_v13 }
  0x57   :  { %3518 = vmatprep.subr.mxu0 %v3982_v1 }
 0x104   :  { %v3462_v15 = vpop.f32.mrf.mxu0 }
 0x105   :  { %v4161_v16 = vadd.f32 %v3462_v15, %v3232_v14 }
 0x106   :  { %v192_v17 = vpop.f32.mrf.mxu0 }
 0x107   :  { %v4163_v18 = vadd.f32 %v3232_v14, %v192_v17 }
 0x108   :  { %v279_v19 = vpop.f32.mrf.mxu1 }
 0x109   :  { %v283_v20 = vadd.f32 %v279_v19, %v4163_v18 }
 0x10a   :  { %v3473_v21 = vpop.f32.mrf.mxu1 }
 0x10b   :  { %v284_v22 = vmax.f32 %v283_v20, 0.0 }
 0x10d   :  { %363 = vst.msk [vmem:[#allocation2] sm:$0x3] %vm362_vm2, %v284_v22  ;;  %v351_v23 = vpop.f32.mrf.mxu0  ;;  %3494 = vmatmul.mubr.msk.f32.vlgmr.msra.gmra.mxu1 %vm209_vm3, %v284_v22 }
 0x10e   :  { %v356_v24 = vrot.slane %v351_v23, 2  ;;  %3508 = vmatpush3.msra.mxu1 %v4086_v3  ;;  %3515 = vmatprep.mubr.msk.f32.mxu1 %vm3983_vm0, %v3982_v1 }
 0x10f   :  { %v3484_v25 = vpop.f32.mrf.mxu0  ;;  %3509 = vmatprep.subr.mxu1 %v3982_v1 }
 0x110   :  { %357 = vrot.lane.b32.xlu0 %v356_v24, %s3984_s4  ;;  %3510 = vmatpush3.msra.mxu1 %v4095_v6 }
 0x111   :  { %3511 = vmatprep.subr.mxu1 %v3982_v1 }
 0x112   :  { %3512 = vmatpush3.msra.mxu1 %v4104_v8 }
 0x113   :  { %3513 = vmatprep.subr.mxu1 %v3982_v1 }
 0x114   :  { %3514 = vmatpush3.msra.mxu1 %v4113_v10 }
 0x115   :  { %3529 = vmatprep.subr.mxu1 %v3982_v1 }
 0x182   :  { %v358_v26 = vpop.permute.xlu0 %357 }
 0x183   :  { %v4180_v27 = vadd.f32 %v358_v26, %v4161_v16 }
 0x185   :  { %v361_v28 = vmax.f32 %v4180_v27, 0.0 }
 0x187   :  { %v448_v29 = vrot.slane %v361_v28, 6 }
 0x189   :  { %449 = vrot.lane.b32.xlu0 %v448_v29, %s3985_s13 }
 0x1cd   :  { %v439_v30 = vpop.f32.mrf.mxu1 }
 0x1ce   :  { %v444_v31 = vrot.slane %v439_v30, 6 }
 0x1cf   :  { %v3495_v32 = vpop.f32.mrf.mxu1 }
 0x1d0   :  { %v446_v33 = vadd.f32 %v444_v31, %v4163_v18 }
 0x1d2   :  { %v447_v34 = vmax.f32 %v446_v33, 0.0 }
 0x1d4   :  { %531 = vst.msk [vmem:[#allocation2] sm:$0xc] %vm530_vm4, %v447_v34  ;;  %v539_v35 = vrot.slane %v447_v34, 2 }
 0x1d6   :  { %3516 = vmatmul.mubr.msk.f32.vlgmr.msra.gmra.mxu1 %vm209_vm3, %v539_v35 }
 0x1d7   :  { %3530 = vmatpush3.msra.mxu1 %v4086_v3  ;;  %3537 = vmatprep.mubr.msk.f32.mxu1 %vm3983_vm0, %v3982_v1 }
 0x1d8   :  { %3531 = vmatprep.subr.mxu1 %v3982_v1 }
 0x1d9   :  { %3532 = vmatpush3.msra.mxu1 %v4095_v6 }
 0x1da   :  { %3533 = vmatprep.subr.mxu1 %v3982_v1 }
 0x1db   :  { %3534 = vmatpush3.msra.mxu1 %v4104_v8 }
 0x1dc   :  { %3535 = vmatprep.subr.mxu1 %v3982_v1 }
 0x1dd   :  { %3536 = vmatpush3.msra.mxu1 %v4113_v10 }
 0x1de   :  { %3551 = vmatprep.subr.mxu1 %v3982_v1 }
 0x1fb   :  { %v450_v36 = vpop.permute.xlu0 %449 }
 0x1fc   :  { %3505 = vmatmul.mubr.msk.f32.vlgmr.msra.gmra.mxu0 %vm209_vm3, %v450_v36 }
 0x1fd   :  { %3519 = vmatpush3.msra.mxu0 %v4107_v9  ;;  %3526 = vmatprep.mubr.msk.f32.mxu0 %vm3983_vm0, %v3982_v1 }
 0x1fe   :  { %3520 = vmatprep.subr.mxu0 %v3982_v1 }
 0x1ff   :  { %3521 = vmatpush3.msra.mxu0 %v4117_v11 }
 0x200   :  { %3522 = vmatprep.subr.mxu0 %v3982_v1 }
 0x201   :  { %3523 = vmatpush3.msra.mxu0 %v4123_v12 }
 0x202   :  { %3524 = vmatprep.subr.mxu0 %v3982_v1 }
 0x203   :  { %3525 = vmatpush3.msra.mxu0 %v4128_v13 }
 0x204   :  { %3540 = vmatprep.subr.mxu0 %v3982_v1 }
 0x296   :  { %v608_v37 = vpop.f32.mrf.mxu1 }
 0x297   :  { %v613_v38 = vrot.slane %v608_v37, 4 }
 0x298   :  { %v3517_v39 = vpop.f32.mrf.mxu1 }
 0x299   :  { %v615_v40 = vadd.f32 %v613_v38, %v4163_v18 }
 0x29b   :  { %v616_v41 = vmax.f32 %v615_v40, 0.0 }
 0x29d   :  { %699 = vst.msk [vmem:[#allocation2] sm:$0x30] %vm536_vm5, %v616_v41  ;;  %v706_v42 = vrot.slane %v616_v41, 4 }
 0x29f   :  { %3538 = vmatmul.mubr.msk.f32.vlgmr.msra.gmra.mxu1 %vm209_vm3, %v706_v42 }
 0x2a0   :  { %3552 = vmatpush3.msra.mxu1 %v4086_v3  ;;  %3559 = vmatprep.mubr.msk.f32.mxu1 %vm3983_vm0, %v3982_v1 }
 0x2a1   :  { %3553 = vmatprep.subr.mxu1 %v3982_v1 }
 0x2a2   :  { %3554 = vmatpush3.msra.mxu1 %v4095_v6 }
 0x2a3   :  { %3555 = vmatprep.subr.mxu1 %v3982_v1 }
 0x2a4   :  { %3556 = vmatpush3.msra.mxu1 %v4104_v8 }
 0x2a5   :  { %3557 = vmatprep.subr.mxu1 %v3982_v1 }
 0x2a6   :  { %3558 = vmatpush3.msra.mxu1 %v4113_v10 }
 0x2a7   :  { %3573 = vmatprep.subr.mxu1 %v3982_v1 }
 0x2bc   :  { %v519_v43 = vpop.f32.mrf.mxu0 }
 0x2bd   :  { %v524_v44 = vrot.slane %v519_v43, 4 }
 0x2be   :  { %v3506_v45 = vpop.f32.mrf.mxu0 }
 0x2bf   :  { %525 = vrot.lane.b32.xlu1 %v524_v44, %s3984_s4 }
 0x331   :  { %v526_v46 = vpop.permute.xlu1 %525 }
 0x332   :  { %v4225_v47 = vadd.f32 %v526_v46, %v4161_v16 }
 0x334   :  { %v529_v48 = vmax.f32 %v4225_v47, 0.0 }
 0x336   :  { %v617_v49 = vrot.slane %v529_v48, 4 }
 0x338   :  { %618 = vrot.lane.b32.xlu1 %v617_v49, %s3985_s13 }
 0x35f   :  { %v775_v50 = vpop.f32.mrf.mxu1 }
 0x360   :  { %v780_v51 = vrot.slane %v775_v50, 2 }
 0x361   :  { %v3539_v52 = vpop.f32.mrf.mxu1 }
 0x362   :  { %v782_v53 = vadd.f32 %v780_v51, %v4163_v18 }
 0x364   :  { %v783_v54 = vmax.f32 %v782_v53, 0.0 }
 0x366   :  { %865 = vst.msk [vmem:[#allocation2] sm:$0xc0] %vm368_vm6, %v783_v54  ;;  %v872_v55 = vrot.slane %v783_v54, 6 }
 0x368   :  { %3560 = vmatmul.mubr.msk.f32.vlgmr.msra.gmra.mxu1 %vm209_vm3, %v872_v55 }
 0x369   :  { %3574 = vmatpush3.msra.mxu1 %v4086_v3  ;;  %3581 = vmatprep.mubr.msk.f32.mxu1 %vm3983_vm0, %v3982_v1 }
 0x36a   :  { %3575 = vmatprep.subr.mxu1 %v3982_v1 }
 0x36b   :  { %3576 = vmatpush3.msra.mxu1 %v4095_v6 }
 0x36c   :  { %3577 = vmatprep.subr.mxu1 %v3982_v1 }
 0x36d   :  { %3578 = vmatpush3.msra.mxu1 %v4104_v8 }
 0x36e   :  { %3579 = vmatprep.subr.mxu1 %v3982_v1 }
 0x36f   :  { %3580 = vmatpush3.msra.mxu1 %v4113_v10 }
 0x370   :  { %3595 = vmatprep.subr.mxu1 %v3982_v1 }
 0x3aa   :  { %v619_v56 = vpop.permute.xlu1 %618 }
 0x3ab   :  { %3527 = vmatmul.mubr.msk.f32.vlgmr.msra.gmra.mxu0 %vm209_vm3, %v619_v56 }
 0x3ac   :  { %3541 = vmatpush3.msra.mxu0 %v4107_v9  ;;  %3548 = vmatprep.mubr.msk.f32.mxu0 %vm3983_vm0, %v3982_v1 }
 0x3ad   :  { %3542 = vmatprep.subr.mxu0 %v3982_v1 }
 0x3ae   :  { %3543 = vmatpush3.msra.mxu0 %v4117_v11 }
 0x3af   :  { %3544 = vmatprep.subr.mxu0 %v3982_v1 }
 0x3b0   :  { %3545 = vmatpush3.msra.mxu0 %v4123_v12 }
 0x3b1   :  { %3546 = vmatprep.subr.mxu0 %v3982_v1 }
 0x3b2   :  { %3547 = vmatpush3.msra.mxu0 %v4128_v13 }
 0x3b3   :  { %3562 = vmatprep.subr.mxu0 %v3982_v1 }
 0x428   :  { %v941_v57 = vpop.f32.mrf.mxu1 }
 0x429   :  { %v945_v58 = vadd.f32 %v941_v57, %v4161_v16 }
 0x42a   :  { %v3561_v59 = vpop.f32.mrf.mxu1 }
 0x42b   :  { %v946_v60 = vmax.f32 %v945_v58, 0.0 }
 0x42d   :  { %1026 = vst.msk [vmem:[#allocation2 + $0x8] sm:$0x3] %vm362_vm2, %v946_v60  ;;  %3582 = vmatmul.mubr.msk.f32.vlgmr.msra.gmra.mxu1 %vm209_vm3, %v946_v60  ;;  %v1531_v60 = vld [vmem:[#allocation2] sm:$0xff] }
 0x42e   :  { %3596 = vmatpush3.msra.mxu1 %v4086_v3  ;;  %3603 = vmatprep.mubr.msk.f32.mxu1 %vm3983_vm0, %v3982_v1 }
 0x42f   :  { %3597 = vmatprep.subr.mxu1 %v3982_v1 }
 0x430   :  { %3598 = vmatpush3.msra.mxu1 %v4095_v6 }
 0x431   :  { %3599 = vmatprep.subr.mxu1 %v3982_v1 }
 0x432   :  { %3600 = vmatpush3.msra.mxu1 %v4104_v8 }
 0x433   :  { %3601 = vmatprep.subr.mxu1 %v3982_v1 }
 0x434   :  { %3602 = vmatpush3.msra.mxu1 %v4113_v10 }
 0x435   :  { %3617 = vmatprep.subr.mxu1 %v3982_v1 }
 0x46b   :  { %v688_v61 = vpop.f32.mrf.mxu0 }
 0x46c   :  { %v693_v62 = vrot.slane %v688_v61, 6  ;;  %v1536_v61 = vld [vmem:[#allocation9 + $0x8] sm:$0xff] }
 0x46d   :  { %v3528_v63 = vpop.f32.mrf.mxu0 }
 0x46e   :  { %694 = vrot.lane.b32.xlu0 %v693_v62, %s3984_s4  ;;  %v1535_v63 = vld [vmem:[#allocation9] sm:$0xff] }
 0x4e0   :  { %v695_v0 = vpop.permute.xlu0 %694 }
 0x4e1   :  { %v4270_v2 = vadd.f32 %v695_v0, %v4161_v16 }
 0x4e3   :  { %v698_v4 = vmax.f32 %v4270_v2, 0.0 }
 0x4e5   :  { %v784_v5 = vrot.slane %v698_v4, 2 }
 0x4e7   :  { %785 = vrot.lane.b32.xlu1 %v784_v5, %s3985_s13  ;;  %v4374_v5 = vld [vmem:[#allocation12 + $0x10] sm:$0xff] }
 0x4ed   :  { %v1101_v7 = vpop.f32.mrf.mxu1 }
 0x4ee   :  { %v1106_v14 = vrot.slane %v1101_v7, 6  ;;  %v4378_v7 = vld [vmem:[#allocation12 + $0x8] sm:$0xff] }
 0x4ef   :  { %v3583_v15 = vpop.f32.mrf.mxu1 }
 0x4f0   :  { %v1108_v17 = vadd.f32 %v1106_v14, %v4161_v16  ;;  %v4382_v15 = vld [vmem:[#allocation12] sm:$0xff] }
 0x4f2   :  { %v1109_v19 = vmax.f32 %v1108_v17, 0.0 }
 0x4f4   :  { %1192 = vst.msk [vmem:[#allocation2 + $0x8] sm:$0xc] %vm530_vm4, %v1109_v19  ;;  %v1199_v20 = vrot.slane %v1109_v19, 2  ;;  %v1542_v19 = vld [vmem:[#allocation9 + $0x38] sm:$0xff] }
 0x4f6   :  { %3604 = vmatmul.mubr.msk.f32.vlgmr.msra.gmra.mxu1 %vm209_vm3, %v1199_v20  ;;  %v1541_v20 = vld [vmem:[#allocation9 + $0x30] sm:$0xff] }
 0x4f7   :  { %3618 = vmatpush3.msra.mxu1 %v4086_v3  ;;  %3625 = vmatprep.mubr.msk.f32.mxu1 %vm3983_vm0, %v3982_v1 }
 0x4f8   :  { %3619 = vmatprep.subr.mxu1 %v3982_v1 }
 0x4f9   :  { %3620 = vmatpush3.msra.mxu1 %v4095_v6 }
 0x4fa   :  { %3621 = vmatprep.subr.mxu1 %v3982_v1 }
 0x4fb   :  { %3622 = vmatpush3.msra.mxu1 %v4104_v8 }
 0x4fc   :  { %3623 = vmatprep.subr.mxu1 %v3982_v1 }
 0x4fd   :  { %3624 = vmatpush3.msra.mxu1 %v4113_v10 }
 0x4fe   :  { %3639 = vmatprep.subr.mxu1 %v1542_v19 }
 0x559   :  { %v786_v21 = vpop.permute.xlu1 %785 }
 0x55a   :  { %3549 = vmatmul.mubr.msk.f32.vlgmr.msra.gmra.mxu0 %vm209_vm3, %v786_v21  ;;  %v1540_v21 = vld [vmem:[#allocation9 + $0x28] sm:$0xff] }
 0x55b   :  { %3563 = vmatpush3.msra.mxu0 %v4107_v9  ;;  %3570 = vmatprep.mubr.msk.f32.mxu0 %vm3983_vm0, %v3982_v1 }
 0x55c   :  { %3564 = vmatprep.subr.mxu0 %v3982_v1 }
 0x55d   :  { %3565 = vmatpush3.msra.mxu0 %v4117_v11 }
 0x55e   :  { %3566 = vmatprep.subr.mxu0 %v3982_v1 }
 0x55f   :  { %3567 = vmatpush3.msra.mxu0 %v4123_v12 }
 0x560   :  { %3568 = vmatprep.subr.mxu0 %v3982_v1 }
 0x561   :  { %3569 = vmatpush3.msra.mxu0 %v4128_v13 }
 0x562   :  { %3584 = vmatprep.subr.mxu0 %v3982_v1 }
 0x5b6   :  { %v1268_v3 = vpop.f32.mrf.mxu1 }
 0x5b7   :  { %v1273_v6 = vrot.slane %v1268_v3, 4 }
 0x5b8   :  { %v3605_v8 = vpop.f32.mrf.mxu1 }
 0x5b9   :  { %v1275_v10 = vadd.f32 %v1273_v6, %v4161_v16  ;;  %v1539_v6 = vld [vmem:[#allocation9 + $0x20] sm:$0xff] }
 0x5bb   :  { %v1276_v22 = vmax.f32 %v1275_v10, 0.0 }
 0x5bd   :  { %1359 = vst.msk [vmem:[#allocation2 + $0x8] sm:$0x30] %vm536_vm5, %v1276_v22  ;;  %v1366_v23 = vrot.slane %v1276_v22, 4 }
 0x5bf   :  { %3626 = vmatmul.mubr.msk.f32.vlgmr.msra.gmra.mxu1 %vm209_vm3, %v1366_v23 }
 0x5c0   :  { %3640 = vmatpush3.msra.mxu1 %v1542_v19 }
 0x5c1   :  { %3641 = vmatprep.subr.mxu1 %v1541_v20 }
 0x5c2   :  { %3642 = vmatpush3.msra.mxu1 %v1541_v20 }
 0x5c3   :  { %3643 = vmatprep.subr.mxu1 %v1540_v21 }
 0x5c4   :  { %3644 = vmatpush3.msra.mxu1 %v1540_v21 }
 0x5c5   :  { %3645 = vmatprep.subr.mxu1 %v1539_v6 }
 0x5c6   :  { %3646 = vmatpush3.msra.mxu1 %v1539_v6 }
 0x5c7   :  { %3661 = vmatprep.subr.mxu1 %v3982_v1 }
 0x61a   :  { %v855_v24 = vpop.f32.mrf.mxu0 }
 0x61b   :  { %860 = vrot.lane.b32.xlu0 %v855_v24, %s3984_s4 }
 0x61c   :  { %v3550_v25 = vpop.f32.mrf.mxu0 }
 0x67f   :  { %v1435_v26 = vpop.f32.mrf.mxu1 }
 0x680   :  { %v1440_v29 = vrot.slane %v1435_v26, 2 }
 0x681   :  { %v3627_v30 = vpop.f32.mrf.mxu1 }
 0x682   :  { %v1442_v31 = vadd.f32 %v1440_v29, %v4161_v16 }
 0x684   :  { %v1443_v32 = vmax.f32 %v1442_v31, 0.0 }
 0x686   :  { %1525 = vst.msk [vmem:[#allocation2 + $0x8] sm:$0xc0] %vm368_vm6, %v1443_v32  ;;  %v4414_v32 = vld [vmem:[#allocation10 + $0x18] sm:$0xff] }
 0x68d   :  { %v861_v33 = vpop.permute.xlu0 %860 }
 0x68e   :  { %v863_v34 = vadd.f32 %v861_v33, %v4161_v16  ;;  %v4423_v33 = vld [vmem:[#allocation10 + $0x8] sm:$0xff] }
 0x690   :  { %v864_v35 = vmax.f32 %v863_v34, 0.0  ;;  %v4427_v34 = vld [vmem:[#allocation10] sm:$0xff] }
 0x692   :  { %867 = vrot.lane.b32.xlu1 %v864_v35, %s3985_s13 }
 0x704   :  { %v868_v36 = vpop.permute.xlu1 %867 }
 0x705   :  { %870 = vst.msk [vmem:[#allocation3 + $0x8] sm:$0x3] %vm362_vm2, %v868_v36  ;;  %3571 = vmatmul.mubr.msk.f32.vlgmr.msra.gmra.mxu0 %vm209_vm3, %v868_v36  ;;  %v3253_v36 = vld [vmem:[%s4693_s8] ss:$0 sm:$0xff] }
 0x706   :  { %3585 = vmatpush3.msra.mxu0 %v4107_v9  ;;  %3592 = vmatprep.mubr.msk.f32.mxu0 %vm3983_vm0, %v3982_v1 }
 0x707   :  { %3586 = vmatprep.subr.mxu0 %v3982_v1 }
 0x708   :  { %3587 = vmatpush3.msra.mxu0 %v4117_v11 }
 0x709   :  { %3588 = vmatprep.subr.mxu0 %v3982_v1 }
 0x70a   :  { %3589 = vmatpush3.msra.mxu0 %v4123_v12 }
 0x70b   :  { %3590 = vmatprep.subr.mxu0 %v3982_v1 }
 0x70c   :  { %3591 = vmatpush3.msra.mxu0 %v4128_v13 }
 0x70d   :  { %3606 = vmatprep.subr.mxu0 %v3982_v1 }
 0x7c5   :  { %v1015_v16 = vpop.f32.mrf.mxu0 }
 0x7c6   :  { %v1020_v37 = vrot.slane %v1015_v16, 2 }
 0x7c7   :  { %v3572_v38 = vpop.f32.mrf.mxu0 }
 0x7c8   :  { %1021 = vrot.lane.b32.xlu0 %v1020_v37, %s3984_s4 }
 0x83a   :  { %v1022_v39 = vpop.permute.xlu0 %1021 }
 0x83b   :  { %v1024_v40 = vadd.f32 %v1022_v39, %v4163_v18 }
 0x83d   :  { %v1025_v41 = vmax.f32 %v1024_v40, 0.0 }
 0x83f   :  { %v1110_v42 = vrot.slane %v1025_v41, 6 }
 0x841   :  { %1111 = vrot.lane.b32.xlu1 %v1110_v42, %s3985_s13 }
 0x8b3   :  { %v1112_v43 = vpop.permute.xlu1 %1111 }
 0x8b4   :  { %3593 = vmatmul.mubr.msk.f32.vlgmr.msra.gmra.mxu0 %vm209_vm3, %v1112_v43 }
 0x8b5   :  { %3607 = vmatpush3.msra.mxu0 %v4107_v9  ;;  %3614 = vmatprep.mubr.msk.f32.mxu0 %vm3983_vm0, %v3982_v1 }
 0x8b6   :  { %3608 = vmatprep.subr.mxu0 %v3982_v1 }
 0x8b7   :  { %3609 = vmatpush3.msra.mxu0 %v4117_v11 }
 0x8b8   :  { %3610 = vmatprep.subr.mxu0 %v3982_v1 }
 0x8b9   :  { %3611 = vmatpush3.msra.mxu0 %v4123_v12 }
 0x8ba   :  { %3612 = vmatprep.subr.mxu0 %v3982_v1 }
 0x8bb   :  { %3613 = vmatpush3.msra.mxu0 %v4128_v13 }
 0x8bc   :  { %3628 = vmatprep.subr.mxu0 %v3982_v1 }
 0x974   :  { %v1181_v44 = vpop.f32.mrf.mxu0 }
 0x975   :  { %v1186_v45 = vrot.slane %v1181_v44, 4 }
 0x976   :  { %v3594_v46 = vpop.f32.mrf.mxu0 }
 0x977   :  { %1187 = vrot.lane.b32.xlu0 %v1186_v45, %s3984_s4 }
 0x9e9   :  { %v1188_v49 = vpop.permute.xlu0 %1187 }
 0x9ea   :  { %v4335_v50 = vadd.f32 %v1188_v49, %v4163_v18 }
 0x9ec   :  { %v1191_v51 = vmax.f32 %v4335_v50, 0.0 }
 0x9ee   :  { %v1277_v52 = vrot.slane %v1191_v51, 4 }
 0x9f0   :  { %1278 = vrot.lane.b32.xlu1 %v1277_v52, %s3985_s13 }
 0xa62   :  { %v1279_v53 = vpop.permute.xlu1 %1278 }
 0xa63   :  { %3615 = vmatmul.mubr.msk.f32.vlgmr.msra.gmra.mxu0 %vm209_vm3, %v1279_v53 }
 0xa64   :  { %3629 = vmatpush3.msra.mxu0 %v4107_v9  ;;  %3636 = vmatprep.mubr.msk.f32.mxu0 %vm3983_vm0, %v3982_v1  ;;  %v1538_v9 = vld [vmem:[#allocation9 + $0x18] sm:$0xff] }
 0xa65   :  { %3630 = vmatprep.subr.mxu0 %v3982_v1 }
 0xa66   :  { %3631 = vmatpush3.msra.mxu0 %v4117_v11 }
 0xa67   :  { %3632 = vmatprep.subr.mxu0 %v3982_v1 }
 0xa68   :  { %3633 = vmatpush3.msra.mxu0 %v4123_v12 }
 0xa69   :  { %3634 = vmatprep.subr.mxu0 %v3982_v1 }
 0xa6a   :  { %3635 = vmatpush3.msra.mxu0 %v4128_v13  ;;  %v1537_v13 = vld [vmem:[#allocation9 + $0x10] sm:$0xff] }
 0xa6b   :  { %3650 = vmatprep.subr.mxu0 %v1538_v9 }
 0xb23   :  { %v1348_v54 = vpop.f32.mrf.mxu0 }
 0xb24   :  { %v1353_v55 = vrot.slane %v1348_v54, 6 }
 0xb25   :  { %v3616_v56 = vpop.f32.mrf.mxu0 }
 0xb26   :  { %1354 = vrot.lane.b32.xlu0 %v1353_v55, %s3984_s4 }
 0xb98   :  { %v1355_v57 = vpop.permute.xlu0 %1354 }
 0xb99   :  { %v1357_v58 = vadd.f32 %v1355_v57, %v4163_v18 }
 0xb9b   :  { %v1358_v59 = vmax.f32 %v1357_v58, 0.0 }
 0xb9d   :  { %v1444_v11 = vrot.slane %v1358_v59, 2 }
 0xb9f   :  { %1445 = vrot.lane.b32.xlu1 %v1444_v11, %s3985_s13 }
 0xba3   :  { %1028 = vrot.lane.b32.xlu1 %v1025_v41, %s3985_s13 }
 0xba7   :  { %1361 = vrot.lane.b32.xlu1 %v1358_v59, %s3985_s13 }
 0xbab   :  { %365 = vrot.lane.b32.xlu1 %v361_v28, %s3985_s13  ;;  %v1532_v28 = vld [vmem:[#allocation2 + $0x8] sm:$0xff] }
 0xbaf   :  { %701 = vrot.lane.b32.xlu1 %v698_v4, %s3985_s13  ;;  %v4372_v4 = vld [vmem:[#allocation12 + $0x18] sm:$0xff] }
 0xc11   :  { %v1446_v12 = vpop.permute.xlu1 %1445 }
 0xc12   :  { %3637 = vmatmul.mubr.msk.f32.vlgmr.msra.gmra.mxu0 %vm209_vm3, %v1446_v12 }
 0xc13   :  { %3651 = vmatpush3.msra.mxu0 %v1538_v9  ;;  %3658 = vmatprep.mubr.msk.f32.mxu0 %vm209_vm3, %v1531_v60 }
 0xc14   :  { %3652 = vmatprep.subr.mxu0 %v1537_v13 }
 0xc15   :  { %3653 = vmatpush3.msra.mxu0 %v1537_v13  ;;  %v1029_v62 = vpop.permute.xlu1 %1028 }
 0xc16   :  { %3654 = vmatprep.subr.mxu0 %v1536_v61  ;;  %1031 = vst.msk [vmem:[#allocation3] sm:$0xc0] %vm368_vm6, %v1029_v62 }
 0xc17   :  { %3655 = vmatpush3.msra.mxu0 %v1536_v61 }
 0xc18   :  { %3656 = vmatprep.subr.mxu0 %v1535_v63 }
 0xc19   :  { %3657 = vmatpush3.msra.mxu0 %v1535_v63  ;;  %v1362_v27 = vpop.permute.xlu1 %1361 }
 0xc1a   :  { %1364 = vst.msk [vmem:[#allocation3] sm:$0xc] %vm530_vm4, %v1362_v27  ;;  %3659 = vmatmul.mubr.msk.f32.vlgmr.msra.gmra.mxu0 %vm209_vm3, %v1532_v28  ;;  %3672 = vmatprep.subr.mxu0 %v3982_v1 }
 0xc1b   :  { %3680 = vmatprep.mubr.msk.f32.mxu0 %vm3983_vm0, %v3982_v1  ;;  %3673 = vmatpush3.msra.mxu0 %v4372_v4 }
 0xc1c   :  { %3674 = vmatprep.subr.mxu0 %v3982_v1 }
 0xc1d   :  { %v366_v0 = vpop.permute.xlu1 %365  ;;  %3675 = vmatpush3.msra.mxu0 %v4374_v5 }
 0xc1e   :  { %369 = vst.msk [vmem:[#allocation3 + $0x8] sm:$0xc0] %vm368_vm6, %v366_v0  ;;  %3676 = vmatprep.subr.mxu0 %v3982_v1 }
 0xc1f   :  { %3677 = vmatpush3.msra.mxu0 %v4378_v7 }
 0xc20   :  { %3678 = vmatprep.subr.mxu0 %v3982_v1 }
 0xc21   :  { %v702_v2 = vpop.permute.xlu1 %701  ;;  %3679 = vmatpush3.msra.mxu0 %v4382_v15 }
 0xc22   :  { %704 = vst.msk [vmem:[#allocation3 + $0x8] sm:$0xc] %vm530_vm4, %v702_v2  ;;  %3681 = vmatmul.mubr.f32.vlgmr.msra.gmra.mxu0 %v3982_v1  ;;  %3694 = vmatprep.subr.mxu0 %v3982_v1 }
 0xc23   :  { %3695 = vmatpush3.msra.mxu0 %v4372_v4  ;;  %3702 = vmatprep.mubr.msk.f32.mxu0 %vm3983_vm0, %v3982_v1 }
 0xc24   :  { %3696 = vmatprep.subr.mxu0 %v3982_v1 }
 0xc25   :  { %3697 = vmatpush3.msra.mxu0 %v4374_v5 }
 0xc26   :  { %3698 = vmatprep.subr.mxu0 %v3982_v1 }
 0xc27   :  { %3699 = vmatpush3.msra.mxu0 %v4378_v7 }
 0xc28   :  { %3700 = vmatprep.subr.mxu0 %v3982_v1 }
 0xc29   :  { %3701 = vmatpush3.msra.mxu0 %v4382_v15 }
 0xc2a   :  { %3716 = vmatprep.subr.mxu0 %v3982_v1 }
 0xcd2   :  { %v1515_v14 = vpop.f32.mrf.mxu0 }
 0xcd3   :  { %1520 = vrot.lane.b32.xlu0 %v1515_v14, %s3984_s4 }
 0xcd4   :  { %v3638_v17 = vpop.f32.mrf.mxu0 }
 0xcd7   :  { %1194 = vrot.lane.b32.xlu0 %v1191_v51, %s3985_s13 }
 0xcda   :  { %v3660_v23 = vpop.f32.mrf.mxu0 }
 0xcdc   :  { %v1696_v24 = vpop.f32.mrf.mxu0 }
 0xce2   :  { %v1860_v25 = vpop.f32.mrf.mxu0 }
 0xce3   :  { %v1865_v26 = vrot.slane %v1860_v25, 2 }
 0xd45   :  { %v1521_v3 = vpop.permute.xlu0 %1520 }
 0xd46   :  { %v1523_v8 = vadd.f32 %v1521_v3, %v4163_v18  ;;  %v3682_v18 = vpop.f32.mrf.mxu0 }
 0xd48   :  { %v1524_v10 = vmax.f32 %v1523_v8, 0.0 }
 0xd49   :  { %v1195_v22 = vpop.permute.xlu0 %1194 }
 0xd4a   :  { %1197 = vst.msk [vmem:[#allocation3] sm:$0x30] %vm536_vm5, %v1195_v22  ;;  %1527 = vrot.lane.b32.xlu0 %v1524_v10, %s3985_s13 }
 0xd4e   :  { %533 = vrot.lane.b32.xlu0 %v529_v48, %s3985_s13  ;;  %v4417_v48 = vld [vmem:[#allocation10 + $0x10] sm:$0xff] }
 0xd52   :  { %1866 = vrot.lane.b32.xlu0 %v1865_v26, %s3984_s4 }
 0xdbc   :  { %v1528_v29 = vpop.permute.xlu0 %1527 }
 0xdbd   :  { %1530 = vst.msk [vmem:[#allocation3] sm:$0x3] %vm362_vm2, %v1528_v29 }
 0xdc0   :  { %v534_v30 = vpop.permute.xlu0 %533 }
 0xdc1   :  { %537 = vst.msk [vmem:[#allocation3 + $0x8] sm:$0x30] %vm536_vm5, %v534_v30 }
 0xdc4   :  { %v1533_v31 = vld [vmem:[#allocation3] sm:$0xff]  ;;  %v1867_v38 = vpop.permute.xlu0 %1866 }
 0xdc5   :  { %3647 = vmatprep.mubr.msk.f32.mxu1 %vm209_vm3, %v1533_v31 }
 0xdc8   :  { %v1534_v47 = vld [vmem:[#allocation3 + $0x8] sm:$0xff] }
 0xdc9   :  { %3648 = vmatmul.mubr.msk.f32.vlgmr.msra.gmra.mxu1 %vm209_vm3, %v1534_v47 }
 0xdca   :  { %3662 = vmatpush3.msra.mxu1 %v4414_v32  ;;  %3669 = vmatprep.mubr.msk.f32.mxu1 %vm3983_vm0, %v3982_v1 }
 0xdcb   :  { %3663 = vmatprep.subr.mxu1 %v3982_v1 }
 0xdcc   :  { %3664 = vmatpush3.msra.mxu1 %v4417_v48 }
 0xdcd   :  { %3665 = vmatprep.subr.mxu1 %v3982_v1 }
 0xdce   :  { %3666 = vmatpush3.msra.mxu1 %v4423_v33 }
 0xdcf   :  { %3667 = vmatprep.subr.mxu1 %v3982_v1 }
 0xdd0   :  { %3668 = vmatpush3.msra.mxu1 %v4427_v34 }
 0xdd1   :  { %3670 = vmatmul.mubr.f32.vlgmr.msra.gmra.mxu1 %v3982_v1  ;;  %3683 = vmatprep.subr.mxu1 %v3982_v1 }
 0xdd2   :  { %3684 = vmatpush3.msra.mxu1 %v4414_v32  ;;  %3691 = vmatprep.mubr.msk.f32.mxu1 %vm3983_vm0, %v3982_v1 }
 0xdd3   :  { %3685 = vmatprep.subr.mxu1 %v3982_v1 }
 0xdd4   :  { %3686 = vmatpush3.msra.mxu1 %v4417_v48 }
 0xdd5   :  { %3687 = vmatprep.subr.mxu1 %v3982_v1 }
 0xdd6   :  { %3688 = vmatpush3.msra.mxu1 %v4423_v33 }
 0xdd7   :  { %3689 = vmatprep.subr.mxu1 %v3982_v1 }
 0xdd8   :  { %3690 = vmatpush3.msra.mxu1 %v4427_v34 }
 0xdd9   :  { %3705 = vmatprep.subr.mxu1 %v3982_v1 }
 0xe89   :  { %v3649_v35 = vpop.f32.mrf.mxu1 }
 0xe8a   :  { %v1702_v16 = vadd.f32 %v3660_v23, %v3649_v35 }
 0xe8b   :  { %v1615_v37 = vpop.f32.mrf.mxu1 }
 0xe8c   :  { %v4447_v39 = vadd.f32 %v3253_v36, %v1702_v16  ;;  %v1697_v40 = vadd.f32 %v1696_v24, %v1615_v37 }
 0xe8e   :  { %v4449_v41 = vadd.f32 %v3253_v36, %v1697_v40  ;;  %v4452_v42 = vadd.f32 %v1867_v38, %v4447_v39 }
 0xe90   :  { %v1870_v43 = vmax.f32 %v4452_v42, 0.0 }
 0xe91   :  { %v1788_v44 = vpop.f32.mrf.mxu1 }
 0xe92   :  { %v1955_v45 = vrot.slane %v1870_v43, 6  ;;  %v1792_v46 = vadd.f32 %v1788_v44, %v4449_v41 }
 0xe93   :  { %v3671_v49 = vpop.f32.mrf.mxu1 }
 0xe94   :  { %v1793_v50 = vmax.f32 %v1792_v46, 0.0  ;;  %1956 = vrot.lane.b32.xlu1 %v1955_v45, %s3985_s13 }
 0xe96   :  { %1871 = vst.msk [vmem:[#allocation2] sm:$0x3] %vm362_vm2, %v1793_v50  ;;  %3692 = vmatmul.mubr.msk.f32.vlgmr.msra.gmra.mxu1 %vm209_vm3, %v1793_v50 }
 0xe97   :  { %3706 = vmatpush3.msra.mxu1 %v4414_v32  ;;  %3713 = vmatprep.mubr.msk.f32.mxu1 %vm3983_vm0, %v3982_v1 }
 0xe98   :  { %3707 = vmatprep.subr.mxu1 %v3982_v1 }
 0xe99   :  { %3708 = vmatpush3.msra.mxu1 %v4417_v48 }
 0xe9a   :  { %3709 = vmatprep.subr.mxu1 %v3982_v1 }
 0xe9b   :  { %3710 = vmatpush3.msra.mxu1 %v4423_v33 }
 0xe9c   :  { %3711 = vmatprep.subr.mxu1 %v3982_v1 }
 0xe9d   :  { %3712 = vmatpush3.msra.mxu1 %v4427_v34 }
 0xe9e   :  { %3727 = vmatprep.subr.mxu1 %v3982_v1 }
 0xf06   :  { %v1957_v51 = vpop.permute.xlu1 %1956 }
 0xf07   :  { %3703 = vmatmul.mubr.msk.f32.vlgmr.msra.gmra.mxu0 %vm209_vm3, %v1957_v51 }
 0xf08   :  { %3717 = vmatpush3.msra.mxu0 %v4372_v4  ;;  %3724 = vmatprep.mubr.msk.f32.mxu0 %vm3983_vm0, %v3982_v1 }
 0xf09   :  { %3718 = vmatprep.subr.mxu0 %v3982_v1 }
 0xf0a   :  { %3719 = vmatpush3.msra.mxu0 %v4374_v5 }
 0xf0b   :  { %3720 = vmatprep.subr.mxu0 %v3982_v1 }
 0xf0c   :  { %3721 = vmatpush3.msra.mxu0 %v4378_v7 }
 0xf0d   :  { %3722 = vmatprep.subr.mxu0 %v3982_v1 }
 0xf0e   :  { %3723 = vmatpush3.msra.mxu0 %v4382_v15 }
 0xf0f   :  { %3738 = vmatprep.subr.mxu0 %v3982_v1 }
 0xf56   :  { %v1946_v52 = vpop.f32.mrf.mxu1 }
 0xf57   :  { %v1951_v53 = vrot.slane %v1946_v52, 6 }
 0xf58   :  { %v3693_v54 = vpop.f32.mrf.mxu1 }
 0xf59   :  { %v1953_v55 = vadd.f32 %v1951_v53, %v4449_v41 }
 0xf5b   :  { %v1954_v56 = vmax.f32 %v1953_v55, 0.0 }
 0xf5d   :  { %2037 = vst.msk [vmem:[#allocation2] sm:$0xc] %vm530_vm4, %v1954_v56  ;;  %v2044_v9 = vrot.slane %v1954_v56, 2 }
 0xf5f   :  { %3714 = vmatmul.mubr.msk.f32.vlgmr.msra.gmra.mxu1 %vm209_vm3, %v2044_v9 }
 0xf60   :  { %3728 = vmatpush3.msra.mxu1 %v4414_v32  ;;  %3735 = vmatprep.mubr.msk.f32.mxu1 %vm3983_vm0, %v3982_v1 }
 0xf61   :  { %3729 = vmatprep.subr.mxu1 %v3982_v1 }
 0xf62   :  { %3730 = vmatpush3.msra.mxu1 %v4417_v48 }
 0xf63   :  { %3731 = vmatprep.subr.mxu1 %v3982_v1 }
 0xf64   :  { %3732 = vmatpush3.msra.mxu1 %v4423_v33 }
 0xf65   :  { %3733 = vmatprep.subr.mxu1 %v3982_v1 }
 0xf66   :  { %3734 = vmatpush3.msra.mxu1 %v4427_v34 }
 0xf67   :  { %3749 = vmatprep.subr.mxu1 %v3982_v1 }
 0xfc7   :  { %v2026_v57 = vpop.f32.mrf.mxu0 }
 0xfc8   :  { %v2031_v58 = vrot.slane %v2026_v57, 4 }
 0xfc9   :  { %v3704_v59 = vpop.f32.mrf.mxu0 }
 0xfca   :  { %2032 = vrot.lane.b32.xlu0 %v2031_v58, %s3984_s4 }
0x101f   :  { %v2113_v11 = vpop.f32.mrf.mxu1 }
0x1020   :  { %v2118_v12 = vrot.slane %v2113_v11, 4 }
0x1021   :  { %v3715_v13 = vpop.f32.mrf.mxu1 }
0x1022   :  { %v2120_v60 = vadd.f32 %v2118_v12, %v4449_v41 }
0x1024   :  { %v2121_v61 = vmax.f32 %v2120_v60, 0.0 }
0x1026   :  { %2204 = vst.msk [vmem:[#allocation2] sm:$0x30] %vm536_vm5, %v2121_v61  ;;  %v2211_v62 = vrot.slane %v2121_v61, 4 }
0x1028   :  { %3736 = vmatmul.mubr.msk.f32.vlgmr.msra.gmra.mxu1 %vm209_vm3, %v2211_v62 }
0x1029   :  { %3750 = vmatpush3.msra.mxu1 %v4414_v32  ;;  %3757 = vmatprep.mubr.msk.f32.mxu1 %vm3983_vm0, %v3982_v1 }
0x102a   :  { %3751 = vmatprep.subr.mxu1 %v3982_v1 }
0x102b   :  { %3752 = vmatpush3.msra.mxu1 %v4417_v48 }
0x102c   :  { %3753 = vmatprep.subr.mxu1 %v3982_v1 }
0x102d   :  { %3754 = vmatpush3.msra.mxu1 %v4423_v33 }
0x102e   :  { %3755 = vmatprep.subr.mxu1 %v3982_v1 }
0x102f   :  { %3756 = vmatpush3.msra.mxu1 %v4427_v34 }
0x1030   :  { %3771 = vmatprep.subr.mxu1 %v3982_v1 }
0x103c   :  { %v2033_v63 = vpop.permute.xlu0 %2032 }
0x103d   :  { %v4510_v27 = vadd.f32 %v2033_v63, %v4447_v39 }
0x103f   :  { %v2036_v28 = vmax.f32 %v4510_v27, 0.0  ;;  %v3204_v27 = vld [vmem:[#allocation4] sm:$0x1] }
0x1041   :  { %v2122_v0 = vrot.slane %v2036_v28, 4 }
0x1043   :  { %2123 = vrot.lane.b32.xlu1 %v2122_v0, %s3985_s13 }
0x10b5   :  { %v2124_v2 = vpop.permute.xlu1 %2123 }
0x10b6   :  { %3725 = vmatmul.mubr.msk.f32.vlgmr.msra.gmra.mxu0 %vm209_vm3, %v2124_v2 }
0x10b7   :  { %3739 = vmatpush3.msra.mxu0 %v4372_v4  ;;  %3746 = vmatprep.mubr.msk.f32.mxu0 %vm3983_vm0, %v3982_v1 }
0x10b8   :  { %3740 = vmatprep.subr.mxu0 %v3982_v1 }
0x10b9   :  { %3741 = vmatpush3.msra.mxu0 %v4374_v5 }
0x10ba   :  { %3742 = vmatprep.subr.mxu0 %v3982_v1 }
0x10bb   :  { %3743 = vmatpush3.msra.mxu0 %v4378_v7 }
0x10bc   :  { %3744 = vmatprep.subr.mxu0 %v3982_v1 }
0x10bd   :  { %3745 = vmatpush3.msra.mxu0 %v4382_v15 }
0x10be   :  { %3760 = vmatprep.subr.mxu0 %v3982_v1 }
0x10e8   :  { %v2280_v14 = vpop.f32.mrf.mxu1 }
0x10e9   :  { %v2285_v17 = vrot.slane %v2280_v14, 2 }
0x10ea   :  { %v3737_v19 = vpop.f32.mrf.mxu1 }
0x10eb   :  { %v2287_v20 = vadd.f32 %v2285_v17, %v4449_v41 }
0x10ed   :  { %v2288_v21 = vmax.f32 %v2287_v20, 0.0 }
0x10ef   :  { %2370 = vst.msk [vmem:[#allocation2] sm:$0xc0] %vm368_vm6, %v2288_v21  ;;  %v2377_v3 = vrot.slane %v2288_v21, 6 }
0x10f1   :  { %3758 = vmatmul.mubr.msk.f32.vlgmr.msra.gmra.mxu1 %vm209_vm3, %v2377_v3 }
0x10f2   :  { %3772 = vmatpush3.msra.mxu1 %v4414_v32  ;;  %3779 = vmatprep.mubr.msk.f32.mxu1 %vm3983_vm0, %v3982_v1 }
0x10f3   :  { %3773 = vmatprep.subr.mxu1 %v3982_v1 }
0x10f4   :  { %3774 = vmatpush3.msra.mxu1 %v4417_v48 }
0x10f5   :  { %3775 = vmatprep.subr.mxu1 %v3982_v1 }
0x10f6   :  { %3776 = vmatpush3.msra.mxu1 %v4423_v33  ;;  %v3036_v42 = vld [vmem:[#allocation2] sm:$0xff] }
0x10f7   :  { %3777 = vmatprep.subr.mxu1 %v3982_v1 }
0x10f8   :  { %3778 = vmatpush3.msra.mxu1 %v4427_v34 }
0x10f9   :  { %3793 = vmatprep.subr.mxu1 %v3982_v1 }
0x1176   :  { %v2193_v6 = vpop.f32.mrf.mxu0 }
0x1177   :  { %v2198_v8 = vrot.slane %v2193_v6, 6 }
0x1178   :  { %v3726_v10 = vpop.f32.mrf.mxu0 }
0x1179   :  { %2199 = vrot.lane.b32.xlu0 %v2198_v8, %s3984_s4 }
0x11b1   :  { %v2446_v22 = vpop.f32.mrf.mxu1 }
0x11b2   :  { %v2450_v23 = vadd.f32 %v2446_v22, %v4447_v39 }
0x11b3   :  { %v3759_v24 = vpop.f32.mrf.mxu1 }
0x11b4   :  { %v2451_v25 = vmax.f32 %v2450_v23, 0.0  ;;  %v3040_v24 = vld [vmem:[%s4694_s9] sm:$0x1] }
0x11b6   :  { %2531 = vst.msk [vmem:[#allocation2 + $0x8] sm:$0x3] %vm362_vm2, %v2451_v25  ;;  %3780 = vmatmul.mubr.msk.f32.vlgmr.msra.gmra.mxu1 %vm209_vm3, %v2451_v25  ;;  %v3042_v25 = vlaneseq }
0x11b7   :  { %3794 = vmatpush3.msra.mxu1 %v4414_v32  ;;  %3801 = vmatprep.mubr.msk.f32.mxu1 %vm3983_vm0, %v3982_v1 }
0x11b8   :  { %3795 = vmatprep.subr.mxu1 %v3982_v1 }
0x11b9   :  { %3796 = vmatpush3.msra.mxu1 %v4417_v48 }
0x11ba   :  { %3797 = vmatprep.subr.mxu1 %v3982_v1 }
0x11bb   :  { %3798 = vmatpush3.msra.mxu1 %v4423_v33 }
0x11bc   :  { %3799 = vmatprep.subr.mxu1 %v3982_v1 }
0x11bd   :  { %3800 = vmatpush3.msra.mxu1 %v4427_v34 }
0x11be   :  { %3815 = vmatprep.subr.mxu1 %v3982_v1 }
0x11eb   :  { %v2200_v26 = vpop.permute.xlu0 %2199 }
0x11ec   :  { %v4555_v18 = vadd.f32 %v2200_v26, %v4447_v39 }
0x11ee   :  { %v2203_v29 = vmax.f32 %v4555_v18, 0.0  ;;  %v3043_v18 = vshrl.u32 %v3042_v25, 7 }
0x11f0   :  { %v2289_v30 = vrot.slane %v2203_v29, 2 }
0x11f2   :  { %2290 = vrot.lane.b32.xlu1 %v2289_v30, %s3985_s13 }
0x1264   :  { %v2291_v31 = vpop.permute.xlu1 %2290 }
0x1265   :  { %3747 = vmatmul.mubr.msk.f32.vlgmr.msra.gmra.mxu0 %vm209_vm3, %v2291_v31 }
0x1266   :  { %3761 = vmatpush3.msra.mxu0 %v4372_v4  ;;  %3768 = vmatprep.mubr.msk.f32.mxu0 %vm3983_vm0, %v3982_v1 }
0x1267   :  { %3762 = vmatprep.subr.mxu0 %v3982_v1 }
0x1268   :  { %3763 = vmatpush3.msra.mxu0 %v4374_v5 }
0x1269   :  { %3764 = vmatprep.subr.mxu0 %v3982_v1 }
0x126a   :  { %3765 = vmatpush3.msra.mxu0 %v4378_v7 }
0x126b   :  { %3766 = vmatprep.subr.mxu0 %v3982_v1 }
0x126c   :  { %3767 = vmatpush3.msra.mxu0 %v4382_v15 }
0x126d   :  { %3782 = vmatprep.subr.mxu0 %v3982_v1 }
0x1276   :  { %v2606_v47 = vpop.f32.mrf.mxu1 }
0x1277   :  { %v2611_v35 = vrot.slane %v2606_v47, 6 }
0x1278   :  { %v3781_v36 = vpop.f32.mrf.mxu1 }
0x1279   :  { %v2613_v16 = vadd.f32 %v2611_v35, %v4447_v39 }
0x127b   :  { %v2614_v37 = vmax.f32 %v2613_v16, 0.0  ;;  %v3986_v16 = vmov 0  }
0x127c   :  { %3863 = vset.pattern.permute.xlu1 %v3986_v16  ;;  %3864 = vset.pattern.permute.xlu0 %v3986_v16 }
0x127d   :  { %2697 = vst.msk [vmem:[#allocation2 + $0x8] sm:$0xc] %vm530_vm4, %v2614_v37  ;;  %v2704_v38 = vrot.slane %v2614_v37, 2 }
0x127f   :  { %3802 = vmatmul.mubr.msk.f32.vlgmr.msra.gmra.mxu1 %vm209_vm3, %v2704_v38 }
0x1280   :  { %3816 = vmatpush3.msra.mxu1 %v4414_v32  ;;  %3823 = vmatprep.mubr.msk.f32.mxu1 %vm3983_vm0, %v3982_v1 }
0x1281   :  { %3817 = vmatprep.subr.mxu1 %v3982_v1 }
0x1282   :  { %3818 = vmatpush3.msra.mxu1 %v4417_v48 }
0x1283   :  { %3819 = vmatprep.subr.mxu1 %v3982_v1 }
0x1284   :  { %3820 = vmatpush3.msra.mxu1 %v4423_v33 }
0x1285   :  { %3821 = vmatprep.subr.mxu1 %v3982_v1 }
0x1286   :  { %3822 = vmatpush3.msra.mxu1 %v4427_v34 }
0x1287   :  { %3837 = vmatprep.subr.mxu1 %v3982_v1 }
0x1325   :  { %v2360_v40 = vpop.f32.mrf.mxu0 }
0x1326   :  { %2365 = vrot.lane.b32.xlu0 %v2360_v40, %s3984_s4 }
0x1327   :  { %v3748_v32 = vpop.f32.mrf.mxu0 }
0x133f   :  { %v2773_v44 = vpop.f32.mrf.mxu1 }
0x1340   :  { %v2778_v45 = vrot.slane %v2773_v44, 4 }
0x1341   :  { %v3803_v46 = vpop.f32.mrf.mxu1 }
0x1342   :  { %v2780_v49 = vadd.f32 %v2778_v45, %v4447_v39 }
0x1344   :  { %v2781_v48 = vmax.f32 %v2780_v49, 0.0 }
0x1346   :  { %2864 = vst.msk [vmem:[#allocation2 + $0x8] sm:$0x30] %vm536_vm5, %v2781_v48  ;;  %v2871_v50 = vrot.slane %v2781_v48, 4 }
0x1348   :  { %3824 = vmatmul.mubr.msk.f32.vlgmr.msra.gmra.mxu1 %vm209_vm3, %v2871_v50 }
0x1349   :  { %3841 = vmatprep.mubr.msk.f32.mxu1 %vm3983_vm0, %v3982_v1 }
0x1398   :  { %v2366_v33 = vpop.permute.xlu0 %2365 }
0x1399   :  { %v2368_v34 = vadd.f32 %v2366_v33, %v4447_v39 }
0x139b   :  { %v2369_v51 = vmax.f32 %v2368_v34, 0.0 }
0x139d   :  { %2372 = vrot.lane.b32.xlu1 %v2369_v51, %s3985_s13 }
0x1408   :  { %v2940_v52 = vpop.f32.mrf.mxu1 }
0x1409   :  { %v2945_v53 = vrot.slane %v2940_v52, 2 }
0x140a   :  { %v3825_v54 = vpop.f32.mrf.mxu1 }
0x140b   :  { %v2947_v55 = vadd.f32 %v2945_v53, %v4447_v39 }
0x140d   :  { %v2948_v56 = vmax.f32 %v2947_v55, 0.0 }
0x140f   :  { %3030 = vst.msk [vmem:[#allocation2 + $0x8] sm:$0xc0] %vm368_vm6, %v2948_v56  ;;  %v2373_v9 = vpop.permute.xlu1 %2372 }
0x1410   :  { %2375 = vst.msk [vmem:[#allocation3 + $0x8] sm:$0x3] %vm362_vm2, %v2373_v9  ;;  %3769 = vmatmul.mubr.msk.f32.vlgmr.msra.gmra.mxu0 %vm209_vm3, %v2373_v9 }
0x1411   :  { %3783 = vmatpush3.msra.mxu0 %v4372_v4  ;;  %3790 = vmatprep.mubr.msk.f32.mxu0 %vm3983_vm0, %v3982_v1 }
0x1412   :  { %3784 = vmatprep.subr.mxu0 %v3982_v1 }
0x1413   :  { %3785 = vmatpush3.msra.mxu0 %v4374_v5 }
0x1414   :  { %3786 = vmatprep.subr.mxu0 %v3982_v1 }
0x1415   :  { %3787 = vmatpush3.msra.mxu0 %v4378_v7 }
0x1416   :  { %3788 = vmatprep.subr.mxu0 %v3982_v1 }
0x1417   :  { %3789 = vmatpush3.msra.mxu0 %v4382_v15 }
0x1418   :  { %3804 = vmatprep.subr.mxu0 %v3982_v1 }
0x14d0   :  { %v2520_v39 = vpop.f32.mrf.mxu0 }
0x14d1   :  { %v2525_v57 = vrot.slane %v2520_v39, 2 }
0x14d2   :  { %v3770_v58 = vpop.f32.mrf.mxu0 }
0x14d3   :  { %2526 = vrot.lane.b32.xlu0 %v2525_v57, %s3984_s4 }
0x1545   :  { %v2527_v59 = vpop.permute.xlu0 %2526 }
0x1546   :  { %v4609_v11 = vadd.f32 %v2527_v59, %v4449_v41 }
0x1548   :  { %v2530_v12 = vmax.f32 %v4609_v11, 0.0 }
0x154a   :  { %v2615_v13 = vrot.slane %v2530_v12, 6 }
0x154c   :  { %2616 = vrot.lane.b32.xlu1 %v2615_v13, %s3985_s13 }
0x15be   :  { %v2617_v60 = vpop.permute.xlu1 %2616 }
0x15bf   :  { %3791 = vmatmul.mubr.msk.f32.vlgmr.msra.gmra.mxu0 %vm209_vm3, %v2617_v60 }
0x15c0   :  { %3805 = vmatpush3.msra.mxu0 %v4372_v4  ;;  %3812 = vmatprep.mubr.msk.f32.mxu0 %vm3983_vm0, %v3982_v1 }
0x15c1   :  { %3806 = vmatprep.subr.mxu0 %v3982_v1 }
0x15c2   :  { %3807 = vmatpush3.msra.mxu0 %v4374_v5 }
0x15c3   :  { %3808 = vmatprep.subr.mxu0 %v3982_v1 }
0x15c4   :  { %3809 = vmatpush3.msra.mxu0 %v4378_v7 }
0x15c5   :  { %3810 = vmatprep.subr.mxu0 %v3982_v1 }
0x15c6   :  { %3811 = vmatpush3.msra.mxu0 %v4382_v15 }
0x15c7   :  { %3826 = vmatprep.subr.mxu0 %v3982_v1 }
0x167f   :  { %v2686_v61 = vpop.f32.mrf.mxu0 }
0x1680   :  { %v2691_v62 = vrot.slane %v2686_v61, 4 }
0x1681   :  { %v3792_v63 = vpop.f32.mrf.mxu0 }
0x1682   :  { %2692 = vrot.lane.b32.xlu0 %v2691_v62, %s3984_s4 }
0x16f4   :  { %v2693_v0 = vpop.permute.xlu0 %2692 }
0x16f5   :  { %v2695_v2 = vadd.f32 %v2693_v0, %v4449_v41 }
0x16f7   :  { %v2696_v14 = vmax.f32 %v2695_v2, 0.0 }
0x16f9   :  { %v2782_v17 = vrot.slane %v2696_v14, 4 }
0x16fb   :  { %2783 = vrot.lane.b32.xlu1 %v2782_v17, %s3985_s13 }
0x176d   :  { %v2784_v19 = vpop.permute.xlu1 %2783 }
0x176e   :  { %3813 = vmatmul.mubr.msk.f32.vlgmr.msra.gmra.mxu0 %vm209_vm3, %v2784_v19 }
0x176f   :  { %3827 = vmatpush3.msra.mxu0 %v4372_v4  ;;  %3834 = vmatprep.mubr.msk.f32.mxu0 %vm3983_vm0, %v3982_v1 }
0x1770   :  { %3828 = vmatprep.subr.mxu0 %v3982_v1 }
0x1771   :  { %3829 = vmatpush3.msra.mxu0 %v4374_v5 }
0x1772   :  { %3830 = vmatprep.subr.mxu0 %v3982_v1 }
0x1773   :  { %3831 = vmatpush3.msra.mxu0 %v4378_v7 }
0x1774   :  { %3832 = vmatprep.subr.mxu0 %v3982_v1 }
0x1775   :  { %3833 = vmatpush3.msra.mxu0 %v4382_v15  ;;  %v3037_v15 = vld [vmem:[#allocation2 + $0x8] sm:$0xff] }
0x1776   :  { %3844 = vmatprep.subr.mxu0 %v3982_v1 }
0x182e   :  { %v2853_v20 = vpop.f32.mrf.mxu0 }
0x182f   :  { %v2858_v21 = vrot.slane %v2853_v20, 6 }
0x1830   :  { %v3814_v4 = vpop.f32.mrf.mxu0 }
0x1831   :  { %2859 = vrot.lane.b32.xlu0 %v2858_v21, %s3984_s4 }
0x18a3   :  { %v2860_v3 = vpop.permute.xlu0 %2859 }
0x18a4   :  { %v2862_v6 = vadd.f32 %v2860_v3, %v4449_v41 }
0x18a6   :  { %v2863_v8 = vmax.f32 %v2862_v6, 0.0 }
0x18a8   :  { %v2949_v5 = vrot.slane %v2863_v8, 2 }
0x18aa   :  { %2950 = vrot.lane.b32.xlu1 %v2949_v5, %s3985_s13 }
0x18ae   :  { %1873 = vrot.lane.b32.xlu1 %v1870_v43, %s3985_s13 }
0x18b2   :  { %2206 = vrot.lane.b32.xlu1 %v2203_v29, %s3985_s13  ;;  %v3044_v29 = vsub.s32 0, %v3043_v18 }
0x18b4   :  { %v3045_v30 = vrot.slane %v3040_v24, %v3044_v29 }
0x18b6   :  { %2699 = vrot.lane.b32.xlu1 %v2696_v14, %s3985_s13 }
0x191c   :  { %v2951_v7 = vpop.permute.xlu1 %2950 }
0x191d   :  { %3835 = vmatmul.mubr.msk.f32.vlgmr.msra.gmra.mxu0 %vm209_vm3, %v2951_v7 }
0x191e   :  { %3845 = vmatpush3.xpose.msk.msra.mxu0 %vm209_vm3, %v3037_v15  ;;  %3848 = vmatprep.mubr.msk.f32.mxu0 %vm3983_vm0, %v3982_v1 }
0x191f   :  { %3846 = vmatprep.subr.mxu0 %v3982_v1 }
0x1920   :  { %v1874_v10 = vpop.permute.xlu1 %1873 }
0x1921   :  { %1876 = vst.msk [vmem:[#allocation3 + $0x8] sm:$0xc0] %vm368_vm6, %v1874_v10 }
0x1922   :  { %3847 = vmatpush3.xpose.msk.msra.mxu0 %vm209_vm3, %v3036_v42 }
0x1924   :  { %v2207_v43 = vpop.permute.xlu1 %2206 }
0x1925   :  { %2209 = vst.msk [vmem:[#allocation3 + $0x8] sm:$0xc] %vm530_vm4, %v2207_v43  ;;  %3849 = vmatmul.mubr.msk.f32.vlgmr.msra.gmra.mxu0 %vm209_vm3, %v3040_v24 }
0x1928   :  { %v2700_v22 = vpop.permute.xlu1 %2699 }
0x1929   :  { %2702 = vst.msk [vmem:[#allocation3] sm:$0x30] %vm536_vm5, %v2700_v22 }
0x19dd   :  { %v3020_v23 = vpop.f32.mrf.mxu0 }
0x19de   :  { %3025 = vrot.lane.b32.xlu0 %v3020_v23, %s3984_s4 }
0x19df   :  { %v3836_v26 = vpop.f32.mrf.mxu0 }
0x19e2   :  { %2039 = vrot.lane.b32.xlu0 %v2036_v28, %s3985_s13 }
0x19e6   :  { %2533 = vrot.lane.b32.xlu0 %v2530_v12, %s3985_s13 }
0x19ea   :  { %2866 = vrot.lane.b32.xlu0 %v2863_v8, %s3985_s13 }
0x19ee   :  { %3046 = vrot.lane.b32.xlu0 %v3045_v30, %s3985_s13 }
0x1a50   :  { %v3026_v31 = vpop.permute.xlu0 %3025 }
0x1a51   :  { %v3028_v47 = vadd.f32 %v3026_v31, %v4449_v41  ;;  %v3200_v41 = vpop.f32.mrf.mxu0 }
0x1a53   :  { %v3029_v35 = vmax.f32 %v3028_v47, 0.0  ;;  %v3850_v40 = vpop.f32.mrf.mxu0 }
0x1a54   :  { %v2040_v36 = vpop.permute.xlu0 %2039 }
0x1a55   :  { %2042 = vst.msk [vmem:[#allocation3 + $0x8] sm:$0x30] %vm536_vm5, %v2040_v36  ;;  %3032 = vrot.lane.b32.xlu1 %v3029_v35, %s3985_s13 }
0x1a58   :  { %v2534_v28 = vpop.permute.xlu0 %2533 }
0x1a59   :  { %2536 = vst.msk [vmem:[#allocation3] sm:$0xc0] %vm368_vm6, %v2534_v28  ;;  %3207 = vperm.xlu1 %3863, %v3204_v27  }
0x1a5c   :  { %v2867_v37 = vpop.permute.xlu0 %2866  ;;  %v3039_v38 = vld [vmem:[#allocation3 + $0x8] sm:$0xff] }
0x1a5d   :  { %2869 = vst.msk [vmem:[#allocation3] sm:$0xc] %vm530_vm4, %v2867_v37  ;;  %3838 = vmatpush3.xpose.msk.msra.mxu1 %vm209_vm3, %v3039_v38 }
0x1a5e   :  { %3839 = vmatprep.subr.mxu1 %v3982_v1 }
0x1a60   :  { %v3047_v45 = vpop.permute.xlu0 %3046 }
0x1ac7   :  { %v3033_v32 = vpop.permute.xlu1 %3032 }
0x1ac8   :  { %3035 = vst.msk [vmem:[#allocation3] sm:$0x3] %vm362_vm2, %v3033_v32 }
0x1acf   :  { %v3038_v44 = vld [vmem:[#allocation3] sm:$0xff] }
0x1ad0   :  { %3840 = vmatpush3.xpose.msk.msra.mxu1 %vm209_vm3, %v3038_v44 }
0x1ad3   :  { %3842 = vmatmul.mubr.msk.f32.vlgmr.msra.gmra.mxu1 %vm209_vm3, %v3047_v45 }
0x1ad4   :  { %v3208_v46 = vpop.permute.xlu1 %3207 }
0x1ad5   :  { %v3213_v49 = vrot.slane %v3208_v46, %v3044_v29 }
0x1b93   :  { %v3122_v48 = vpop.f32.mrf.mxu1 }
0x1b94   :  { %v3201_v50 = vadd.f32 %v3200_v41, %v3122_v48 }
0x1b95   :  { %v3843_v33 = vpop.f32.mrf.mxu1 }
0x1b96   :  { %v3214_v34 = vadd.f32 %v3213_v49, %v3201_v50 }
0x1b98   :  { %v3215_v51 = vsub.f32 0.0, %v3214_v34 }
0x1b9a   :  { %v3216_v52 = vmul.f32 1.442695, %v3215_v51 }
0x1b9c   :  { %3865 = vpow2.f32 %v3216_v52 }
0x1ba9   :  { %v3866_v1 = vpop.eup %3865 }
0x1baa   :  { %v3218_v53 = vadd.f32 1.0, %v3866_v1 }
0x1bac   :  { %3867 = vrcp.f32 %v3218_v53 }
0x1bb9   :  { %v3868_v54 = vpop.eup %3867 }
0x1bba   :  { %vm3221_vm8 = vcmp.ne.f32.partialorder %v3868_v54, %v3868_v54 }
0x1bbb   :  { %v3222_v55 = vsel %vm3221_vm8, 0.0, %v3868_v54 }
0x1bbc   :  { %3224 = vst.msk [vmem:[%s4696_s11] sm:$0x1] %vm3223_vm7, %v3222_v55 }
0x1bbd   :  { %3229 = vsyncpa [#allocation6], 1 }
0x1bbe   :  { %3230 = vsyncpa [#allocation8], 1 }
0x1bbf   :  { %3231 = vsyncpa [#allocation11], 1 }

</bundles_post_ra>
